<compile_context>
chip_gen: v7x
topology: tpu7x:2x2x1
jax: 0.10.0
libtpu: 0.0.40
codegen_flags: <defaults>
</compile_context>

<pallas_src>
import numpy as np
import jax
import jax.numpy as jnp
from jax import lax
from jax.experimental import pallas as pl
from jax.experimental.pallas import tpu as pltpu

NUM_INPUT_CHANNELS = 3
NUM_ACTION_DIMS = 2
HEIGHT = 16
WIDTH = 16

CNN_CHANNELS = [8, 16]
CNN_KERNELS = [(3, 3), (3, 3)]
CNN_STRIDES = [(2, 2), (2, 2)]
FC_HIDDEN = [32]

OUT_PAD = 128   # lane-dense width for the final (B, 1) output slab
ACT_PAD = 8     # pad action feature dim 2 -> 8 (sublane-aligned matmul K)


def conv_out_shape(h_in, kernel_size, stride):
    return (h_in - kernel_size) // stride + 1


# ----------------------------------------------------------------------------
# Parameter construction in PyTorch layout (deterministic, in-script).
# ----------------------------------------------------------------------------
def init_params(key):
    params = {"cnn": [], "fc": []}
    in_channels = [NUM_INPUT_CHANNELS] + CNN_CHANNELS[:-1]

    h, w = HEIGHT, WIDTH
    for cin, cout, (kh, kw), (sh, sw) in zip(in_channels, CNN_CHANNELS,
                                             CNN_KERNELS, CNN_STRIDES):
        key, k1, k2 = jax.random.split(key, 3)
        fan_in = cin * kh * kw
        bound = 1.0 / np.sqrt(fan_in)
        W = jax.random.uniform(k1, (cout, cin, kh, kw), jnp.float32, -bound, bound)
        bvec = jax.random.uniform(k2, (cout,), jnp.float32, -bound, bound)
        params["cnn"].append((W, bvec))
        h = conv_out_shape(h, kh, sh)
        w = conv_out_shape(w, kw, sw)

    in_features = CNN_CHANNELS[-1] * h * w + NUM_ACTION_DIMS
    fc_units = [in_features] + FC_HIDDEN + [1]
    for fin, fout in zip(fc_units[:-1], fc_units[1:]):
        key, k1, k2 = jax.random.split(key, 3)
        bound = 1.0 / np.sqrt(fin)
        W = jax.random.uniform(k1, (fin, fout), jnp.float32, -bound, bound)
        bvec = jax.random.uniform(k2, (fout,), jnp.float32, -bound, bound)
        params["fc"].append((W, bvec))
    return params, (h, w)


# ----------------------------------------------------------------------------
# One-time (init) lowering of the PyTorch-layout params into the layout the
# fused kernel consumes.
# ----------------------------------------------------------------------------
def _conv_as_dense(weight, h_in, w_in, stride):
    """nn.Conv2d weight (Cout,Cin,kh,kw), VALID conv on an NCHW (Cin,h_in,w_in)
    image, expressed as a dense matrix M of shape
    (Cin*h_in*w_in, Cout*Ho*Wo) so that  out_flat = x_flat @ M
    with NCHW flattening on both sides (exact linear reformulation)."""
    weight = np.asarray(weight, dtype=np.float32)
    c_out, c_in, kh, kw = weight.shape
    sh, sw = stride
    ho_n = conv_out_shape(h_in, kh, sh)
    wo_n = conv_out_shape(w_in, kw, sw)
    M = np.zeros((c_in * h_in * w_in, c_out * ho_n * wo_n), dtype=np.float32)
    ci = np.arange(c_in)[:, None]
    co = np.arange(c_out)[None, :]
    for ho in range(ho_n):
        for wo in range(wo_n):
            for i in range(kh):
                for j in range(kw):
                    h = ho * sh + i
                    w = wo * sw + j
                    rows = ci * (h_in * w_in) + h * w_in + w      # (Cin, 1)
                    cols = co * (ho_n * wo_n) + ho * wo_n + wo    # (1, Cout)
                    M[rows, cols] = weight[:, :, i, j].T          # (Cin, Cout)
    return M, ho_n, wo_n


def prepare_dense_params(params):
    (cw1, cb1), (cw2, cb2) = params["cnn"]
    M1, h1, w1 = _conv_as_dense(cw1, HEIGHT, WIDTH, CNN_STRIDES[0])
    M2, h2, w2 = _conv_as_dense(cw2, h1, w1, CNN_STRIDES[1])
    b1_row = np.repeat(np.asarray(cb1, np.float32), h1 * w1)[None, :]
    b2_row = np.repeat(np.asarray(cb2, np.float32), h2 * w2)[None, :]

    (wf1, bf1), (wf2, bf2) = params["fc"]
    wf1 = np.asarray(wf1, np.float32)
    bf1 = np.asarray(bf1, np.float32)
    wf2 = np.asarray(wf2, np.float32)
    bf2 = np.asarray(bf2, np.float32)

    n_state = CNN_CHANNELS[-1] * h2 * w2            # 144 (PyTorch view order)
    wf1_state = wf1[:n_state]                       # (144, 32)
    wf1_act = np.zeros((ACT_PAD, wf1.shape[1]), np.float32)
    wf1_act[:NUM_ACTION_DIMS] = wf1[n_state:]       # action rows, K padded to 8
    bf1_row = bf1[None, :]

    wf2_pad = np.zeros((wf2.shape[0], OUT_PAD), np.float32)
    wf2_pad[:, :wf2.shape[1]] = wf2                 # lane-dense final layer
    bf2_pad = np.zeros((1, OUT_PAD), np.float32)
    bf2_pad[0, :wf2.shape[1]] = bf2

    return {
        "m1": jnp.asarray(M1), "b1": jnp.asarray(b1_row),
        "m2": jnp.asarray(M2), "b2": jnp.asarray(b2_row),
        "wf1s": jnp.asarray(wf1_state), "wf1a": jnp.asarray(wf1_act),
        "bf1": jnp.asarray(bf1_row),
        "wf2": jnp.asarray(wf2_pad), "bf2": jnp.asarray(bf2_pad),
    }


# ----------------------------------------------------------------------------
# Fused Pallas kernel: whole forward pass, everything VMEM-resident.
# ----------------------------------------------------------------------------
def _critic_fused_kernel(x_ref, act_ref, m1_ref, b1_ref, m2_ref, b2_ref,
                         wf1s_ref, wf1a_ref, bf1_ref, wf2_ref, bf2_ref, o_ref):
    f32 = jnp.float32
    # conv1 (as dense matmul over NCHW-flattened state) + ReLU
    h1 = jnp.dot(x_ref[...], m1_ref[...], preferred_element_type=f32) + b1_ref[...]
    h1 = jnp.maximum(h1, 0.0)
    # conv2 + ReLU
    h2 = jnp.dot(h1, m2_ref[...], preferred_element_type=f32) + b2_ref[...]
    h2 = jnp.maximum(h2, 0.0)
    # fc1 on [flattened state features ; action]; the concat is a split matmul
    h3 = (jnp.dot(h2, wf1s_ref[...], preferred_element_type=f32)
          + jnp.dot(act_ref[...], wf1a_ref[...], preferred_element_type=f32)
          + bf1_ref[...])
    h3 = jnp.maximum(h3, 0.0)
    # fc2 (no activation), written lane-dense; real value lives in column 0
    out = jnp.dot(h3, wf2_ref[...], preferred_element_type=f32) + bf2_ref[...]
    o_ref[...] = out.astype(o_ref.dtype)


def critic_forward(dense, state, action):
    """Mirrors CriticNetwork.forward. state: (B,C,H,W) NCHW, action: (B,A)."""
    B = state.shape[0]
    x_flat = state.reshape(B, -1)                                   # NCHW flatten
    act_pad = jnp.pad(action, ((0, 0), (0, ACT_PAD - NUM_ACTION_DIMS)))
    k_in = x_flat.shape[1]

    tm = B if B <= 128 else 128                                     # row tile
    grid = (pl.cdiv(B, tm),)

    flops = 2 * B * (k_in * dense["m1"].shape[1]
                     + dense["m2"].shape[0] * dense["m2"].shape[1]
                     + dense["wf1s"].shape[0] * dense["wf1s"].shape[1]
                     + dense["wf1a"].shape[0] * dense["wf1a"].shape[1]
                     + dense["wf2"].shape[0] * dense["wf2"].shape[1])
    bytes_accessed = 4 * (x_flat.size + act_pad.size + B * OUT_PAD
                          + sum(int(v.size) for v in dense.values()))

    rowwise = lambda i: (i, 0)   # batch-tiled operands
    resident = lambda i: (0, 0)  # weights: same block every step (stay in VMEM)

    out_slab = pl.pallas_call(
        _critic_fused_kernel,
        out_shape=jax.ShapeDtypeStruct((B, OUT_PAD), jnp.float32),
        grid=grid,
        in_specs=[
            pl.BlockSpec((tm, k_in), rowwise),
            pl.BlockSpec((tm, ACT_PAD), rowwise),
            pl.BlockSpec(dense["m1"].shape, resident),
            pl.BlockSpec(dense["b1"].shape, resident),
            pl.BlockSpec(dense["m2"].shape, resident),
            pl.BlockSpec(dense["b2"].shape, resident),
            pl.BlockSpec(dense["wf1s"].shape, resident),
            pl.BlockSpec(dense["wf1a"].shape, resident),
            pl.BlockSpec(dense["bf1"].shape, resident),
            pl.BlockSpec(dense["wf2"].shape, resident),
            pl.BlockSpec(dense["bf2"].shape, resident),
        ],
        out_specs=pl.BlockSpec((tm, OUT_PAD), rowwise),
        compiler_params=pltpu.CompilerParams(
            dimension_semantics=("parallel",)),   # shards batch tiles on v7x TCs
        cost_estimate=pl.CostEstimate(
            flops=flops, transcendentals=0, bytes_accessed=bytes_accessed),
    )(x_flat, act_pad, dense["m1"], dense["b1"], dense["m2"], dense["b2"],
      dense["wf1s"], dense["wf1a"], dense["bf1"], dense["wf2"], dense["bf2"])

    return out_slab[:, :1]                                          # (B, 1)


# ----------------------------------------------------------------------------
# Pure-JAX reference (PyTorch semantics, original parameter layout).
# ----------------------------------------------------------------------------
def critic_forward_ref(params, state, action):
    x = state
    for (W, b), stride in zip(params["cnn"], CNN_STRIDES):
        x = lax.conv_general_dilated(
            x, W, window_strides=stride, padding="VALID",
            dimension_numbers=("NCHW", "OIHW", "NCHW"))
        x = jnp.maximum(x + b[None, :, None, None], 0.0)
    x = x.reshape(x.shape[0], -1)
    x = jnp.concatenate([x, action], axis=1)
    n_fc = len(params["fc"])
    for idx, (W, b) in enumerate(params["fc"]):
        x = x @ W + b[None, :]
        if idx < n_fc - 1:
            x = jnp.maximum(x, 0.0)
    return x


if __name__ == "__main__":
    key = jax.random.PRNGKey(0)
    key, k_state, k_action, k_params = jax.random.split(key, 4)

    B = 2
    state = jax.random.normal(k_state, (B, NUM_INPUT_CHANNELS, HEIGHT, WIDTH),
                              jnp.float32)
    action = jax.random.normal(k_action, (B, NUM_ACTION_DIMS), jnp.float32)

    params, _ = init_params(k_params)
    dense = prepare_dense_params(params)      # one-time weight lowering

    fwd = jax.jit(critic_forward)
    out = jax.block_until_ready(fwd(dense, state, action))
    assert out.shape == (B, 1), out.shape

    ref = jax.block_until_ready(critic_forward_ref(params, state, action))
    assert jnp.allclose(out, ref, rtol=1e-3, atol=1e-3), (out, ref)

    print("KERNEL_OK")
</pallas_src>

<mosaic_0001>
module attributes {stable_mosaic.version = 11 : i64} {
  func.func @_critic_fused_kernel(%arg0: i32, %arg1: memref<2x768xf32, #tpu.memory_space<vmem>>, %arg2: memref<2x8xf32, #tpu.memory_space<vmem>>, %arg3: memref<768x392xf32, #tpu.memory_space<vmem>>, %arg4: memref<1x392xf32, #tpu.memory_space<vmem>>, %arg5: memref<392x144xf32, #tpu.memory_space<vmem>>, %arg6: memref<1x144xf32, #tpu.memory_space<vmem>>, %arg7: memref<144x32xf32, #tpu.memory_space<vmem>>, %arg8: memref<8x32xf32, #tpu.memory_space<vmem>>, %arg9: memref<1x32xf32, #tpu.memory_space<vmem>>, %arg10: memref<32x128xf32, #tpu.memory_space<vmem>>, %arg11: memref<1x128xf32, #tpu.memory_space<vmem>>, %arg12: memref<2x128xf32, #tpu.memory_space<vmem>>) attributes {dimension_semantics = [#tpu.dimension_semantics<parallel>], iteration_bounds = array<i64: 1>, scalar_prefetch = 0 : i64, scratch_operands = 0 : i64, tpu.core_type = #tpu.core_type<tc>, window_params = [{transform_indices = @transform_0, window_bounds = array<i64: 2, 768>}, {transform_indices = @transform_1, window_bounds = array<i64: 2, 8>}, {pipeline_mode = #tpu.pipeline_mode<synchronous>, transform_indices = @transform_2, window_bounds = array<i64: 768, 392>}, {pipeline_mode = #tpu.pipeline_mode<synchronous>, transform_indices = @transform_3, window_bounds = array<i64: 1, 392>}, {pipeline_mode = #tpu.pipeline_mode<synchronous>, transform_indices = @transform_4, window_bounds = array<i64: 392, 144>}, {pipeline_mode = #tpu.pipeline_mode<synchronous>, transform_indices = @transform_5, window_bounds = array<i64: 1, 144>}, {pipeline_mode = #tpu.pipeline_mode<synchronous>, transform_indices = @transform_6, window_bounds = array<i64: 144, 32>}, {pipeline_mode = #tpu.pipeline_mode<synchronous>, transform_indices = @transform_7, window_bounds = array<i64: 8, 32>}, {pipeline_mode = #tpu.pipeline_mode<synchronous>, transform_indices = @transform_8, window_bounds = array<i64: 1, 32>}, {pipeline_mode = #tpu.pipeline_mode<synchronous>, transform_indices = @transform_9, window_bounds = array<i64: 32, 128>}, {pipeline_mode = #tpu.pipeline_mode<synchronous>, transform_indices = @transform_10, window_bounds = array<i64: 1, 128>}, {transform_indices = @transform_11, window_bounds = array<i64: 2, 128>}]} {
    %c0 = arith.constant 0 : index
    %c0_0 = arith.constant 0 : index
    %0 = vector.load %arg1[%c0, %c0_0] : memref<2x768xf32, #tpu.memory_space<vmem>>, vector<2x768xf32>
    %c0_1 = arith.constant 0 : index
    %c0_2 = arith.constant 0 : index
    %1 = vector.load %arg3[%c0_1, %c0_2] : memref<768x392xf32, #tpu.memory_space<vmem>>, vector<768x392xf32>
    %cst = arith.constant dense<0.000000e+00> : vector<2x392xf32>
    %2 = tpu.matmul %0, %1, %cst {dimension_numbers = #tpu.dot_dimension_numbers<[1], [0], [0], [1], [0, 0, 1, 1], [], []>} : vector<2x768xf32>, vector<768x392xf32>, vector<2x392xf32> -> vector<2x392xf32>
    %c0_3 = arith.constant 0 : index
    %c0_4 = arith.constant 0 : index
    %3 = vector.load %arg4[%c0_3, %c0_4] : memref<1x392xf32, #tpu.memory_space<vmem>>, vector<1x392xf32>
    %4 = vector.broadcast %3 : vector<1x392xf32> to vector<2x392xf32>
    %5 = arith.addf %2, %4 : vector<2x392xf32>
    %cst_5 = arith.constant 0.000000e+00 : f32
    %6 = vector.broadcast %cst_5 : f32 to vector<2x392xf32>
    %7 = arith.maximumf %5, %6 : vector<2x392xf32>
    %c0_6 = arith.constant 0 : index
    %c0_7 = arith.constant 0 : index
    %8 = vector.load %arg5[%c0_6, %c0_7] : memref<392x144xf32, #tpu.memory_space<vmem>>, vector<392x144xf32>
    %cst_8 = arith.constant dense<0.000000e+00> : vector<2x144xf32>
    %9 = tpu.matmul %7, %8, %cst_8 {dimension_numbers = #tpu.dot_dimension_numbers<[1], [0], [0], [1], [0, 0, 1, 1], [], []>} : vector<2x392xf32>, vector<392x144xf32>, vector<2x144xf32> -> vector<2x144xf32>
    %c0_9 = arith.constant 0 : index
    %c0_10 = arith.constant 0 : index
    %10 = vector.load %arg6[%c0_9, %c0_10] : memref<1x144xf32, #tpu.memory_space<vmem>>, vector<1x144xf32>
    %11 = vector.broadcast %10 : vector<1x144xf32> to vector<2x144xf32>
    %12 = arith.addf %9, %11 : vector<2x144xf32>
    %cst_11 = arith.constant 0.000000e+00 : f32
    %13 = vector.broadcast %cst_11 : f32 to vector<2x144xf32>
    %14 = arith.maximumf %12, %13 : vector<2x144xf32>
    %c0_12 = arith.constant 0 : index
    %c0_13 = arith.constant 0 : index
    %15 = vector.load %arg7[%c0_12, %c0_13] : memref<144x32xf32, #tpu.memory_space<vmem>>, vector<144x32xf32>
    %cst_14 = arith.constant dense<0.000000e+00> : vector<2x32xf32>
    %16 = tpu.matmul %14, %15, %cst_14 {dimension_numbers = #tpu.dot_dimension_numbers<[1], [0], [0], [1], [0, 0, 1, 1], [], []>} : vector<2x144xf32>, vector<144x32xf32>, vector<2x32xf32> -> vector<2x32xf32>
    %c0_15 = arith.constant 0 : index
    %c0_16 = arith.constant 0 : index
    %17 = vector.load %arg2[%c0_15, %c0_16] : memref<2x8xf32, #tpu.memory_space<vmem>>, vector<2x8xf32>
    %c0_17 = arith.constant 0 : index
    %c0_18 = arith.constant 0 : index
    %18 = vector.load %arg8[%c0_17, %c0_18] : memref<8x32xf32, #tpu.memory_space<vmem>>, vector<8x32xf32>
    %cst_19 = arith.constant dense<0.000000e+00> : vector<2x32xf32>
    %19 = tpu.matmul %17, %18, %cst_19 {dimension_numbers = #tpu.dot_dimension_numbers<[1], [0], [0], [1], [0, 0, 1, 1], [], []>} : vector<2x8xf32>, vector<8x32xf32>, vector<2x32xf32> -> vector<2x32xf32>
    %20 = arith.addf %16, %19 : vector<2x32xf32>
    %c0_20 = arith.constant 0 : index
    %c0_21 = arith.constant 0 : index
    %21 = vector.load %arg9[%c0_20, %c0_21] : memref<1x32xf32, #tpu.memory_space<vmem>>, vector<1x32xf32>
    %22 = vector.broadcast %21 : vector<1x32xf32> to vector<2x32xf32>
    %23 = arith.addf %20, %22 : vector<2x32xf32>
    %cst_22 = arith.constant 0.000000e+00 : f32
    %24 = vector.broadcast %cst_22 : f32 to vector<2x32xf32>
    %25 = arith.maximumf %23, %24 : vector<2x32xf32>
    %c0_23 = arith.constant 0 : index
    %c0_24 = arith.constant 0 : index
    %26 = vector.load %arg10[%c0_23, %c0_24] : memref<32x128xf32, #tpu.memory_space<vmem>>, vector<32x128xf32>
    %cst_25 = arith.constant dense<0.000000e+00> : vector<2x128xf32>
    %27 = tpu.matmul %25, %26, %cst_25 {dimension_numbers = #tpu.dot_dimension_numbers<[1], [0], [0], [1], [0, 0, 1, 1], [], []>} : vector<2x32xf32>, vector<32x128xf32>, vector<2x128xf32> -> vector<2x128xf32>
    %c0_26 = arith.constant 0 : index
    %c0_27 = arith.constant 0 : index
    %28 = vector.load %arg11[%c0_26, %c0_27] : memref<1x128xf32, #tpu.memory_space<vmem>>, vector<1x128xf32>
    %29 = vector.broadcast %28 : vector<1x128xf32> to vector<2x128xf32>
    %30 = arith.addf %27, %29 : vector<2x128xf32>
    %c0_28 = arith.constant 0 : index
    %c0_29 = arith.constant 0 : index
    %31 = vector.load %arg12[%c0_28, %c0_29] : memref<2x128xf32, #tpu.memory_space<vmem>>, vector<2x128xf32>
    tpu.vector_store %arg12[%c0_28, %c0_29], %30 {strides = array<i32>} : memref<2x128xf32, #tpu.memory_space<vmem>>, vector<2x128xf32>,
    return
  }
  func.func @transform_0(%arg0: i32) -> (i32, i32) {
    %c0_i32 = arith.constant 0 : i32
    %c0_i32_0 = arith.constant 0 : i32
    return %arg0, %c0_i32 : i32, i32
  }
  func.func @transform_1(%arg0: i32) -> (i32, i32) {
    %c0_i32 = arith.constant 0 : i32
    %c0_i32_0 = arith.constant 0 : i32
    return %arg0, %c0_i32 : i32, i32
  }
  func.func @transform_2(%arg0: i32) -> (i32, i32) {
    %c0_i32 = arith.constant 0 : i32
    %c0_i32_0 = arith.constant 0 : i32
    %c0_i32_1 = arith.constant 0 : i32
    return %c0_i32, %c0_i32_0 : i32, i32
  }
  func.func @transform_3(%arg0: i32) -> (i32, i32) {
    %c0_i32 = arith.constant 0 : i32
    %c0_i32_0 = arith.constant 0 : i32
    %c0_i32_1 = arith.constant 0 : i32
    return %c0_i32, %c0_i32_0 : i32, i32
  }
  func.func @transform_4(%arg0: i32) -> (i32, i32) {
    %c0_i32 = arith.constant 0 : i32
    %c0_i32_0 = arith.constant 0 : i32
    %c0_i32_1 = arith.constant 0 : i32
    return %c0_i32, %c0_i32_0 : i32, i32
  }
  func.func @transform_5(%arg0: i32) -> (i32, i32) {
    %c0_i32 = arith.constant 0 : i32
    %c0_i32_0 = arith.constant 0 : i32
    %c0_i32_1 = arith.constant 0 : i32
    return %c0_i32, %c0_i32_0 : i32, i32
  }
  func.func @transform_6(%arg0: i32) -> (i32, i32) {
    %c0_i32 = arith.constant 0 : i32
    %c0_i32_0 = arith.constant 0 : i32
    %c0_i32_1 = arith.constant 0 : i32
    return %c0_i32, %c0_i32_0 : i32, i32
  }
  func.func @transform_7(%arg0: i32) -> (i32, i32) {
    %c0_i32 = arith.constant 0 : i32
    %c0_i32_0 = arith.constant 0 : i32
    %c0_i32_1 = arith.constant 0 : i32
    return %c0_i32, %c0_i32_0 : i32, i32
  }
  func.func @transform_8(%arg0: i32) -> (i32, i32) {
    %c0_i32 = arith.constant 0 : i32
    %c0_i32_0 = arith.constant 0 : i32
    %c0_i32_1 = arith.constant 0 : i32
    return %c0_i32, %c0_i32_0 : i32, i32
  }
  func.func @transform_9(%arg0: i32) -> (i32, i32) {
    %c0_i32 = arith.constant 0 : i32
    %c0_i32_0 = arith.constant 0 : i32
    %c0_i32_1 = arith.constant 0 : i32
    return %c0_i32, %c0_i32_0 : i32, i32
  }
  func.func @transform_10(%arg0: i32) -> (i32, i32) {
    %c0_i32 = arith.constant 0 : i32
    %c0_i32_0 = arith.constant 0 : i32
    %c0_i32_1 = arith.constant 0 : i32
    return %c0_i32, %c0_i32_0 : i32, i32
  }
  func.func @transform_11(%arg0: i32) -> (i32, i32) {
    %c0_i32 = arith.constant 0 : i32
    %c0_i32_0 = arith.constant 0 : i32
    return %arg0, %c0_i32 : i32, i32
  }
}

</mosaic_0001>

<bundles_post_ra>
// kernel: critic_forward.1
= control target key start
LH: loop header
LB: loop body
LE: loop exit
PB: predicated region body
PF: predicated region fallthrough
CT: control target
= control target key end

     0   :  { %vm1019_vm0 = vcmask 64512   ;;  %vm2000_vm1 = vmmov 0   ;;  %vm1260_vm2 = vcmask 130048   ;;  %vm1354_vm3 = vcmask 261120   ;;  %s3655_s2 = inlined_call_operand.vmem [shape: f32[768,392], index: 2, kind: input, shape index: {}]   ;;  %s3656_s0 = inlined_call_operand.vmem [shape: f32[2,768], index: 0, kind: input, shape index: {}]   ;;  %s3657_s4 = inlined_call_operand.vmem [shape: f32[392,144], index: 4, kind: input, shape index: {}]   ;;  %s3658_s3 = inlined_call_operand.vmem [shape: f32[1,392], index: 3, kind: input, shape index: {}]   ;;  %s3659_s7 = inlined_call_operand.vmem [shape: f32[8,32], index: 7, kind: input, shape index: {}]   ;;  %s3660_s6 = inlined_call_operand.vmem [shape: f32[144,32], index: 6, kind: input, shape index: {}]   ;;  %s3661_s1 = inlined_call_operand.vmem [shape: f32[2,8], index: 1, kind: input, shape index: {}]   ;;  %s3662_s5 = inlined_call_operand.vmem [shape: f32[1,144], index: 5, kind: input, shape index: {}]   ;;  %s3663_s9 = inlined_call_operand.vmem [shape: f32[32,128], index: 9, kind: input, shape index: {}]   ;;  %s3664_s8 = inlined_call_operand.vmem [shape: f32[1,32], index: 8, kind: input, shape index: {}]   ;;  %s3665_s10 = inlined_call_operand.vmem [shape: f32[1,128], index: 10, kind: input, shape index: {}]   ;;  %s3666_s11 = inlined_call_operand.vmem [shape: f32[2,128], index: 11, kind: output, shape index: {}]  }
   0x1   :  { %v41_v0 = vld [vmem:[%s3655_s2 + $0x8] sm:$0xff]  ;;  %v43_v2 = vld [vmem:[%s3655_s2 + $0x18] sm:$0xff]  ;;  %v40_v5 = vld [vmem:[%s3655_s2] sm:$0xff] }
   0x2   :  { %v45_v1 = vld [vmem:[%s3655_s2 + $0x28] sm:$0xff]  ;;  %v47_v4 = vld [vmem:[%s3655_s2 + $0x38] sm:$0xff]  ;;  %v44_v6 = vld [vmem:[%s3655_s2 + $0x20] sm:$0xff] }
   0x3   :  { %v1463_v3 = vpack.c.bf16 %v45_v1, %v41_v0  ;;  %v1655_v7 = vpack.c.bf16 %v47_v4, %v43_v2  ;;  %v1465_v8 = vpack.c.bf16 %v44_v6, %v40_v5  ;;  %v42_v9 = vld [vmem:[%s3655_s2 + $0x10] sm:$0xff]  ;;  %v49_v11 = vld [vmem:[%s3655_s2 + $0x48] sm:$0xff]  ;;  %v51_v14 = vld [vmem:[%s3655_s2 + $0x58] sm:$0xff] }
   0x4   :  { %v46_v10 = vld [vmem:[%s3655_s2 + $0x30] sm:$0xff]  ;;  %v53_v13 = vld [vmem:[%s3655_s2 + $0x68] sm:$0xff]  ;;  %v55_v15 = vld [vmem:[%s3655_s2 + $0x78] sm:$0xff] }
   0x5   :  { %1464 = vmatprep.subr.bf16.mxu0 %v1463_v3  ;;  %v1657_v12 = vpack.c.bf16 %v46_v10, %v42_v9  ;;  %1656 = vmatprep.subr.bf16.mxu1 %v1655_v7  ;;  %v1467_v16 = vpack.c.bf16 %v53_v13, %v49_v11  ;;  %v1659_v17 = vpack.c.bf16 %v55_v15, %v51_v14  ;;  %v48_v18 = vld [vmem:[%s3655_s2 + $0x40] sm:$0xff]  ;;  %v50_v20 = vld [vmem:[%s3655_s2 + $0x50] sm:$0xff]  ;;  %v57_v23 = vld [vmem:[%s3655_s2 + $0x88] sm:$0xff] }
   0x6   :  { %1466 = vmatpush1.bf16.msra.mxu0 %v1465_v8  ;;  %v52_v19 = vld [vmem:[%s3655_s2 + $0x60] sm:$0xff]  ;;  %v54_v22 = vld [vmem:[%s3655_s2 + $0x70] sm:$0xff]  ;;  %v61_v24 = vld [vmem:[%s3655_s2 + $0xa8] sm:$0xff] }
   0x7   :  { %1658 = vmatpush1.bf16.msra.mxu1 %v1657_v12  ;;  %v1469_v21 = vpack.c.bf16 %v52_v19, %v48_v18  ;;  %1468 = vmatprep.subr.bf16.mxu0 %v1467_v16  ;;  %v1661_v25 = vpack.c.bf16 %v54_v22, %v50_v20  ;;  %v1471_v26 = vpack.c.bf16 %v61_v24, %v57_v23  ;;  %v59_v27 = vld [vmem:[%s3655_s2 + $0x98] sm:$0xff]  ;;  %v56_v29 = vld [vmem:[%s3655_s2 + $0x80] sm:$0xff]  ;;  %v58_v32 = vld [vmem:[%s3655_s2 + $0x90] sm:$0xff] }
   0x8   :  { %1660 = vmatprep.subr.bf16.mxu1 %v1659_v17  ;;  %v63_v28 = vld [vmem:[%s3655_s2 + $0xb8] sm:$0xff]  ;;  %v60_v31 = vld [vmem:[%s3655_s2 + $0xa0] sm:$0xff]  ;;  %v62_v33 = vld [vmem:[%s3655_s2 + $0xb0] sm:$0xff] }
   0x9   :  { %v1663_v30 = vpack.c.bf16 %v63_v28, %v59_v27  ;;  %v1473_v34 = vpack.c.bf16 %v60_v31, %v56_v29  ;;  %v65_v35 = vld [vmem:[%s3655_s2 + $0xc8] sm:$0xff]  ;;  %v67_v37 = vld [vmem:[%s3655_s2 + $0xd8] sm:$0xff]  ;;  %v1665_v38 = vpack.c.bf16 %v62_v33, %v58_v32  ;;  %v64_v41 = vld [vmem:[%s3655_s2 + $0xc0] sm:$0xff] }
   0xa   :  { %1470 = vmatpush1.bf16.msra.mxu0 %v1469_v21  ;;  %v69_v36 = vld [vmem:[%s3655_s2 + $0xe8] sm:$0xff]  ;;  %v71_v40 = vld [vmem:[%s3655_s2 + $0xf8] sm:$0xff]  ;;  %v68_v42 = vld [vmem:[%s3655_s2 + $0xe0] sm:$0xff] }
   0xb   :  { %1662 = vmatpush1.bf16.msra.mxu1 %v1661_v25  ;;  %1472 = vmatprep.subr.bf16.mxu0 %v1471_v26  ;;  %v1475_v39 = vpack.c.bf16 %v69_v36, %v65_v35  ;;  %v1667_v43 = vpack.c.bf16 %v71_v40, %v67_v37  ;;  %v66_v44 = vld [vmem:[%s3655_s2 + $0xd0] sm:$0xff]  ;;  %v73_v46 = vld [vmem:[%s3655_s2 + $0x108] sm:$0xff]  ;;  %v75_v48 = vld [vmem:[%s3655_s2 + $0x118] sm:$0xff]  ;;  %v1477_v50 = vpack.c.bf16 %v68_v42, %v64_v41 }
   0xc   :  { %1664 = vmatprep.subr.bf16.mxu1 %v1663_v30  ;;  %v70_v45 = vld [vmem:[%s3655_s2 + $0xf0] sm:$0xff]  ;;  %v77_v47 = vld [vmem:[%s3655_s2 + $0x128] sm:$0xff]  ;;  %v79_v49 = vld [vmem:[%s3655_s2 + $0x138] sm:$0xff] }
   0xd   :  { %v1669_v51 = vpack.c.bf16 %v70_v45, %v66_v44  ;;  %v1479_v52 = vpack.c.bf16 %v77_v47, %v73_v46  ;;  %v72_v53 = vld [vmem:[%s3655_s2 + $0x100] sm:$0xff]  ;;  %v74_v55 = vld [vmem:[%s3655_s2 + $0x110] sm:$0xff]  ;;  %v1671_v56 = vpack.c.bf16 %v79_v49, %v75_v48  ;;  %v81_v58 = vld [vmem:[%s3655_s2 + $0x148] sm:$0xff]  ;;  %v426_v46 = vlaneseq }
   0xe   :  { %1474 = vmatpush1.bf16.msra.mxu0 %v1473_v34  ;;  %v76_v54 = vld [vmem:[%s3655_s2 + $0x120] sm:$0xff]  ;;  %v78_v57 = vld [vmem:[%s3655_s2 + $0x130] sm:$0xff]  ;;  %v85_v59 = vld [vmem:[%s3655_s2 + $0x168] sm:$0xff]  ;;  %v1997_v47 = vmov 1983009808  }
   0xf   :  { %1666 = vmatpush1.bf16.msra.mxu1 %v1665_v38  ;;  %1476 = vmatprep.subr.bf16.mxu0 %v1475_v39  ;;  %v83_v60 = vld [vmem:[%s3655_s2 + $0x158] sm:$0xff]  ;;  %v1481_v62 = vpack.c.bf16 %v76_v54, %v72_v53  ;;  %v1673_v63 = vpack.c.bf16 %v78_v57, %v74_v55  ;;  %v1483_v0 = vpack.c.bf16 %v85_v59, %v81_v58  ;;  %v80_v1 = vld [vmem:[%s3655_s2 + $0x140] sm:$0xff]  ;;  %v82_v3 = vld [vmem:[%s3655_s2 + $0x150] sm:$0xff]  ;;  %v450_v48 = vunpack.c.l.s4 %v1997_v47 }
  0x10   :  { %1668 = vmatprep.subr.bf16.mxu1 %v1667_v43  ;;  %v87_v61 = vld [vmem:[%s3655_s2 + $0x178] sm:$0xff]  ;;  %v84_v2 = vld [vmem:[%s3655_s2 + $0x160] sm:$0xff]  ;;  %v86_v5 = vld [vmem:[%s3655_s2 + $0x170] sm:$0xff] }
  0x11   :  { %v1675_v4 = vpack.c.bf16 %v87_v61, %v83_v60  ;;  %v89_v6 = vld [vmem:[%s3655_s2 + $0x188] sm:$0xff]  ;;  %v91_v8 = vld [vmem:[%s3655_s2 + $0x198] sm:$0xff]  ;;  %v1485_v10 = vpack.c.bf16 %v84_v2, %v80_v1  ;;  %v1677_v11 = vpack.c.bf16 %v86_v5, %v82_v3  ;;  %v88_v13 = vld [vmem:[%s3655_s2 + $0x180] sm:$0xff]  ;;  %v2313_v61 = vshrl.u32 %v426_v46, 7 }
  0x12   :  { %1478 = vmatpush1.bf16.msra.mxu0 %v1477_v50  ;;  %v93_v7 = vld [vmem:[%s3655_s2 + $0x1a8] sm:$0xff]  ;;  %v95_v9 = vld [vmem:[%s3655_s2 + $0x1b8] sm:$0xff]  ;;  %v92_v14 = vld [vmem:[%s3655_s2 + $0x1a0] sm:$0xff] }
  0x13   :  { %1670 = vmatpush1.bf16.msra.mxu1 %v1669_v51  ;;  %1480 = vmatprep.subr.bf16.mxu0 %v1479_v52  ;;  %v1487_v12 = vpack.c.bf16 %v93_v7, %v89_v6  ;;  %v90_v15 = vld [vmem:[%s3655_s2 + $0x190] sm:$0xff]  ;;  %v1679_v16 = vpack.c.bf16 %v95_v9, %v91_v8  ;;  %v97_v18 = vld [vmem:[%s3655_s2 + $0x1c8] sm:$0xff]  ;;  %v99_v20 = vld [vmem:[%s3655_s2 + $0x1d8] sm:$0xff]  ;;  %v1489_v22 = vpack.c.bf16 %v92_v14, %v88_v13 }
  0x14   :  { %1672 = vmatprep.subr.bf16.mxu1 %v1671_v56  ;;  %v94_v17 = vld [vmem:[%s3655_s2 + $0x1b0] sm:$0xff]  ;;  %v101_v19 = vld [vmem:[%s3655_s2 + $0x1e8] sm:$0xff]  ;;  %v103_v21 = vld [vmem:[%s3655_s2 + $0x1f8] sm:$0xff] }
  0x15   :  { %v1681_v23 = vpack.c.bf16 %v94_v17, %v90_v15  ;;  %v1491_v24 = vpack.c.bf16 %v101_v19, %v97_v18  ;;  %v96_v25 = vld [vmem:[%s3655_s2 + $0x1c0] sm:$0xff]  ;;  %v98_v27 = vld [vmem:[%s3655_s2 + $0x1d0] sm:$0xff]  ;;  %v1683_v28 = vpack.c.bf16 %v103_v21, %v99_v20  ;;  %v105_v30 = vld [vmem:[%s3655_s2 + $0x208] sm:$0xff] }
  0x16   :  { %1482 = vmatpush1.bf16.msra.mxu0 %v1481_v62  ;;  %v100_v26 = vld [vmem:[%s3655_s2 + $0x1e0] sm:$0xff]  ;;  %v102_v29 = vld [vmem:[%s3655_s2 + $0x1f0] sm:$0xff]  ;;  %v109_v31 = vld [vmem:[%s3655_s2 + $0x228] sm:$0xff]  ;;  %v451_v62 = vunpack.c.0.s8 %v450_v48 }
  0x17   :  { %1674 = vmatpush1.bf16.msra.mxu1 %v1673_v63  ;;  %1484 = vmatprep.subr.bf16.mxu0 %v1483_v0  ;;  %v107_v32 = vld [vmem:[%s3655_s2 + $0x218] sm:$0xff]  ;;  %v1493_v34 = vpack.c.bf16 %v100_v26, %v96_v25  ;;  %v1685_v35 = vpack.c.bf16 %v102_v29, %v98_v27  ;;  %v1495_v36 = vpack.c.bf16 %v109_v31, %v105_v30  ;;  %v104_v37 = vld [vmem:[%s3655_s2 + $0x200] sm:$0xff]  ;;  %v106_v39 = vld [vmem:[%s3655_s2 + $0x210] sm:$0xff] }
  0x18   :  { %1676 = vmatprep.subr.bf16.mxu1 %v1675_v4  ;;  %v111_v33 = vld [vmem:[%s3655_s2 + $0x238] sm:$0xff]  ;;  %v108_v38 = vld [vmem:[%s3655_s2 + $0x220] sm:$0xff]  ;;  %v110_v41 = vld [vmem:[%s3655_s2 + $0x230] sm:$0xff] }
  0x19   :  { %v1687_v40 = vpack.c.bf16 %v111_v33, %v107_v32  ;;  %v113_v42 = vld [vmem:[%s3655_s2 + $0x248] sm:$0xff]  ;;  %v115_v44 = vld [vmem:[%s3655_s2 + $0x258] sm:$0xff]  ;;  %v1497_v49 = vpack.c.bf16 %v108_v38, %v104_v37  ;;  %v1689_v50 = vpack.c.bf16 %v110_v41, %v106_v39  ;;  %v112_v52 = vld [vmem:[%s3655_s2 + $0x240] sm:$0xff] }
  0x1a   :  { %1486 = vmatpush1.bf16.msra.mxu0 %v1485_v10  ;;  %v117_v43 = vld [vmem:[%s3655_s2 + $0x268] sm:$0xff]  ;;  %v119_v45 = vld [vmem:[%s3655_s2 + $0x278] sm:$0xff]  ;;  %v116_v53 = vld [vmem:[%s3655_s2 + $0x260] sm:$0xff] }
  0x1b   :  { %1678 = vmatpush1.bf16.msra.mxu1 %v1677_v11  ;;  %1488 = vmatprep.subr.bf16.mxu0 %v1487_v12  ;;  %v1499_v51 = vpack.c.bf16 %v117_v43, %v113_v42  ;;  %v114_v54 = vld [vmem:[%s3655_s2 + $0x250] sm:$0xff]  ;;  %v1691_v55 = vpack.c.bf16 %v119_v45, %v115_v44  ;;  %v121_v57 = vld [vmem:[%s3655_s2 + $0x288] sm:$0xff]  ;;  %v123_v59 = vld [vmem:[%s3655_s2 + $0x298] sm:$0xff]  ;;  %v1501_v63 = vpack.c.bf16 %v116_v53, %v112_v52 }
  0x1c   :  { %1680 = vmatprep.subr.bf16.mxu1 %v1679_v16  ;;  %v118_v56 = vld [vmem:[%s3655_s2 + $0x270] sm:$0xff]  ;;  %v125_v58 = vld [vmem:[%s3655_s2 + $0x2a8] sm:$0xff]  ;;  %v127_v60 = vld [vmem:[%s3655_s2 + $0x2b8] sm:$0xff]  ;;  %v2340_v11 = vsub.s32 %v451_v62, %v2313_v61 }
  0x1d   :  { %v1693_v0 = vpack.c.bf16 %v118_v56, %v114_v54  ;;  %v1503_v1 = vpack.c.bf16 %v125_v58, %v121_v57  ;;  %v120_v2 = vld [vmem:[%s3655_s2 + $0x280] sm:$0xff]  ;;  %v122_v4 = vld [vmem:[%s3655_s2 + $0x290] sm:$0xff]  ;;  %v1695_v5 = vpack.c.bf16 %v127_v60, %v123_v59  ;;  %v129_v7 = vld [vmem:[%s3655_s2 + $0x2c8] sm:$0xff] }
  0x1e   :  { %1490 = vmatpush1.bf16.msra.mxu0 %v1489_v22  ;;  %v124_v3 = vld [vmem:[%s3655_s2 + $0x2a0] sm:$0xff]  ;;  %v126_v6 = vld [vmem:[%s3655_s2 + $0x2b0] sm:$0xff]  ;;  %v133_v8 = vld [vmem:[%s3655_s2 + $0x2e8] sm:$0xff] }
  0x1f   :  { %1682 = vmatpush1.bf16.msra.mxu1 %v1681_v23  ;;  %1492 = vmatprep.subr.bf16.mxu0 %v1491_v24  ;;  %v131_v9 = vld [vmem:[%s3655_s2 + $0x2d8] sm:$0xff]  ;;  %v1505_v12 = vpack.c.bf16 %v124_v3, %v120_v2  ;;  %v128_v13 = vld [vmem:[%s3655_s2 + $0x2c0] sm:$0xff]  ;;  %v1697_v14 = vpack.c.bf16 %v126_v6, %v122_v4  ;;  %v1507_v15 = vpack.c.bf16 %v133_v8, %v129_v7  ;;  %v130_v17 = vld [vmem:[%s3655_s2 + $0x2d0] sm:$0xff] }
  0x20   :  { %1684 = vmatprep.subr.bf16.mxu1 %v1683_v28  ;;  %v135_v10 = vld [vmem:[%s3655_s2 + $0x2f8] sm:$0xff]  ;;  %v132_v16 = vld [vmem:[%s3655_s2 + $0x2e0] sm:$0xff]  ;;  %v134_v18 = vld [vmem:[%s3655_s2 + $0x2f0] sm:$0xff] }
  0x21   :  { %v1699_v19 = vpack.c.bf16 %v135_v10, %v131_v9  ;;  %v137_v20 = vld [vmem:[%s3655_s2 + $0x308] sm:$0xff]  ;;  %v2363_v22 = vld [vmem:[%s3656_s0] sm:$0xff]  ;;  %v139_v23 = vld [vmem:[%s3655_s2 + $0x318] sm:$0xff]  ;;  %v1509_v26 = vpack.c.bf16 %v132_v16, %v128_v13  ;;  %v1701_v27 = vpack.c.bf16 %v134_v18, %v130_v17 }
  0x22   :  { %1494 = vmatpush1.bf16.msra.mxu0 %v1493_v34  ;;  %v141_v21 = vld [vmem:[%s3655_s2 + $0x328] sm:$0xff]  ;;  %v143_v24 = vld [vmem:[%s3655_s2 + $0x338] sm:$0xff]  ;;  %v2373_v25 = vrot.slane %v2363_v22, %v2340_v11  ;;  %v136_v29 = vld [vmem:[%s3655_s2 + $0x300] sm:$0xff]  ;;  %v448_v8 = vcombine.high %v2363_v22, %v2363_v22 }
  0x23   :  { %1686 = vmatpush1.bf16.msra.mxu1 %v1685_v35  ;;  %1496 = vmatprep.subr.bf16.mxu0 %v1495_v36  ;;  %v1511_v28 = vpack.c.bf16 %v141_v21, %v137_v20  ;;  %v140_v30 = vld [vmem:[%s3655_s2 + $0x320] sm:$0xff]  ;;  %v138_v31 = vld [vmem:[%s3655_s2 + $0x310] sm:$0xff]  ;;  %v1703_v33 = vpack.c.bf16 %v143_v24, %v139_v23  ;;  %v145_v35 = vld [vmem:[%s3655_s2 + $0x348] sm:$0xff] }
  0x24   :  { %1688 = vmatprep.subr.bf16.mxu1 %v1687_v40  ;;  %v463_v32 = vcombine.high %v2373_v25, %v2373_v25  ;;  %v142_v34 = vld [vmem:[%s3655_s2 + $0x330] sm:$0xff]  ;;  %v149_v36 = vld [vmem:[%s3655_s2 + $0x368] sm:$0xff]  ;;  %v147_v37 = vld [vmem:[%s3655_s2 + $0x358] sm:$0xff]  ;;  %v1513_v39 = vpack.c.bf16 %v140_v30, %v136_v29  ;;  %v2494_v24 = vrot.slane %v448_v8, %v2340_v11 }
  0x25   :  { %v151_v38 = vld [vmem:[%s3655_s2 + $0x378] sm:$0xff]  ;;  %v1705_v40 = vpack.c.bf16 %v142_v34, %v138_v31  ;;  %v1515_v41 = vpack.c.bf16 %v149_v36, %v145_v35  ;;  %v144_v42 = vld [vmem:[%s3655_s2 + $0x340] sm:$0xff]  ;;  %v146_v44 = vld [vmem:[%s3655_s2 + $0x350] sm:$0xff] }
  0x26   :  { %1498 = vmatpush1.bf16.msra.mxu0 %v1497_v49  ;;  %543 = vmatprep.mubr.f32.mxu0 %v463_v32  ;;  %v148_v43 = vld [vmem:[%s3655_s2 + $0x360] sm:$0xff]  ;;  %v1707_v45 = vpack.c.bf16 %v151_v38, %v147_v37  ;;  %v150_v46 = vld [vmem:[%s3655_s2 + $0x370] sm:$0xff]  ;;  %v153_v47 = vld [vmem:[%s3655_s2 + $0x388] sm:$0xff]  ;;  %v464_v37 = vcombine.high %v2494_v24, %v2494_v24 }
  0x27   :  { %1690 = vmatpush1.bf16.msra.mxu1 %v1689_v50  ;;  %1500 = vmatprep.subr.bf16.mxu0 %v1499_v51  ;;  %v157_v48 = vld [vmem:[%s3655_s2 + $0x3a8] sm:$0xff]  ;;  %v155_v49 = vld [vmem:[%s3655_s2 + $0x398] sm:$0xff]  ;;  %v1517_v51 = vpack.c.bf16 %v148_v43, %v144_v42  ;;  %v1709_v52 = vpack.c.bf16 %v150_v46, %v146_v44  ;;  %v152_v54 = vld [vmem:[%s3655_s2 + $0x380] sm:$0xff] }
  0x28   :  { %1692 = vmatprep.subr.bf16.mxu1 %v1691_v55  ;;  %756 = vmatprep.mubr.f32.mxu1 %v463_v32  ;;  %v159_v50 = vld [vmem:[%s3655_s2 + $0x3b8] sm:$0xff]  ;;  %v1519_v53 = vpack.c.bf16 %v157_v48, %v153_v47  ;;  %v156_v55 = vld [vmem:[%s3655_s2 + $0x3a0] sm:$0xff]  ;;  %v154_v56 = vld [vmem:[%s3655_s2 + $0x390] sm:$0xff] }
  0x29   :  { %v1711_v57 = vpack.c.bf16 %v159_v50, %v155_v49  ;;  %v158_v58 = vld [vmem:[%s3655_s2 + $0x3b0] sm:$0xff]  ;;  %v161_v59 = vld [vmem:[%s3655_s2 + $0x3c8] sm:$0xff]  ;;  %v163_v62 = vld [vmem:[%s3655_s2 + $0x3d8] sm:$0xff] }
  0x2a   :  { %1502 = vmatpush1.bf16.msra.mxu0 %v1501_v63  ;;  %v165_v60 = vld [vmem:[%s3655_s2 + $0x3e8] sm:$0xff]  ;;  %v167_v63 = vld [vmem:[%s3655_s2 + $0x3f8] sm:$0xff]  ;;  %v160_v3 = vld [vmem:[%s3655_s2 + $0x3c0] sm:$0xff] }
  0x2b   :  { %1694 = vmatpush1.bf16.msra.mxu1 %v1693_v0  ;;  %1504 = vmatprep.subr.bf16.mxu0 %v1503_v1  ;;  %v1521_v0 = vpack.c.bf16 %v156_v55, %v152_v54  ;;  %v1713_v1 = vpack.c.bf16 %v158_v58, %v154_v56  ;;  %v1523_v2 = vpack.c.bf16 %v165_v60, %v161_v59  ;;  %v164_v4 = vld [vmem:[%s3655_s2 + $0x3e0] sm:$0xff]  ;;  %v166_v7 = vld [vmem:[%s3655_s2 + $0x3f0] sm:$0xff]  ;;  %v169_v9 = vld [vmem:[%s3655_s2 + $0x408] sm:$0xff] }
  0x2c   :  { %1696 = vmatprep.subr.bf16.mxu1 %v1695_v5  ;;  %v162_v5 = vld [vmem:[%s3655_s2 + $0x3d0] sm:$0xff]  ;;  %v1715_v6 = vpack.c.bf16 %v167_v63, %v163_v62  ;;  %v173_v10 = vld [vmem:[%s3655_s2 + $0x428] sm:$0xff]  ;;  %v175_v13 = vld [vmem:[%s3655_s2 + $0x438] sm:$0xff] }
  0x2d   :  { %v1527_v16 = vpack.c.bf16 %v173_v10, %v169_v9  ;;  %v168_v17 = vld [vmem:[%s3655_s2 + $0x400] sm:$0xff]  ;;  %v174_v21 = vld [vmem:[%s3655_s2 + $0x430] sm:$0xff]  ;;  %v177_v22 = vld [vmem:[%s3655_s2 + $0x448] sm:$0xff] }
  0x2e   :  { %1506 = vmatpush1.bf16.msra.mxu0 %v1505_v12  ;;  %v171_v12 = vld [vmem:[%s3655_s2 + $0x418] sm:$0xff]  ;;  %v172_v18 = vld [vmem:[%s3655_s2 + $0x420] sm:$0xff]  ;;  %v181_v23 = vld [vmem:[%s3655_s2 + $0x468] sm:$0xff] }
  0x2f   :  { %1698 = vmatpush1.bf16.msra.mxu1 %v1697_v14  ;;  %1508 = vmatprep.subr.bf16.mxu0 %v1507_v15  ;;  %v1525_v14 = vpack.c.bf16 %v164_v4, %v160_v3  ;;  %v1717_v15 = vpack.c.bf16 %v166_v7, %v162_v5  ;;  %v1719_v20 = vpack.c.bf16 %v175_v13, %v171_v12  ;;  %v176_v31 = vld [vmem:[%s3655_s2 + $0x440] sm:$0xff]  ;;  %v178_v32 = vld [vmem:[%s3655_s2 + $0x450] sm:$0xff]  ;;  %v185_v35 = vld [vmem:[%s3655_s2 + $0x488] sm:$0xff] }
  0x30   :  { %1700 = vmatprep.subr.bf16.mxu1 %v1699_v19  ;;  %v170_v19 = vld [vmem:[%s3655_s2 + $0x410] sm:$0xff]  ;;  %v1531_v30 = vpack.c.bf16 %v181_v23, %v177_v22  ;;  %v180_v11 = vld [vmem:[%s3655_s2 + $0x460] sm:$0xff]  ;;  %v189_v36 = vld [vmem:[%s3655_s2 + $0x4a8] sm:$0xff] }
  0x31   :  { %v1721_v29 = vpack.c.bf16 %v174_v21, %v170_v19  ;;  %v182_v34 = vld [vmem:[%s3655_s2 + $0x470] sm:$0xff]  ;;  %v187_v38 = vld [vmem:[%s3655_s2 + $0x498] sm:$0xff]  ;;  %v1535_v42 = vpack.c.bf16 %v189_v36, %v185_v35  ;;  %v184_v43 = vld [vmem:[%s3655_s2 + $0x480] sm:$0xff] }
  0x32   :  { %1510 = vmatpush1.bf16.msra.mxu0 %v1509_v26  ;;  %v179_v26 = vld [vmem:[%s3655_s2 + $0x458] sm:$0xff]  ;;  %v188_v44 = vld [vmem:[%s3655_s2 + $0x4a0] sm:$0xff]  ;;  %v193_v47 = vld [vmem:[%s3655_s2 + $0x4c8] sm:$0xff] }
  0x33   :  { %1702 = vmatpush1.bf16.msra.mxu1 %v1701_v27  ;;  %1512 = vmatprep.subr.bf16.mxu0 %v1511_v28  ;;  %v183_v27 = vld [vmem:[%s3655_s2 + $0x478] sm:$0xff]  ;;  %v1529_v28 = vpack.c.bf16 %v172_v18, %v168_v17  ;;  %v197_v48 = vld [vmem:[%s3655_s2 + $0x4e8] sm:$0xff]  ;;  %v192_v54 = vld [vmem:[%s3655_s2 + $0x4c0] sm:$0xff] }
  0x34   :  { %1704 = vmatprep.subr.bf16.mxu1 %v1703_v33  ;;  %v1723_v33 = vpack.c.bf16 %v183_v27, %v179_v26  ;;  %v195_v49 = vld [vmem:[%s3655_s2 + $0x4d8] sm:$0xff]  ;;  %v196_v55 = vld [vmem:[%s3655_s2 + $0x4e0] sm:$0xff]  ;;  %v194_v56 = vld [vmem:[%s3655_s2 + $0x4d0] sm:$0xff] }
  0x35   :  { %v199_v50 = vld [vmem:[%s3655_s2 + $0x4f8] sm:$0xff]  ;;  %v198_v58 = vld [vmem:[%s3655_s2 + $0x4f0] sm:$0xff]  ;;  %v201_v59 = vld [vmem:[%s3655_s2 + $0x508] sm:$0xff] }
  0x36   :  { %1514 = vmatpush1.bf16.msra.mxu0 %v1513_v39  ;;  %v191_v39 = vld [vmem:[%s3655_s2 + $0x4b8] sm:$0xff]  ;;  %v205_v60 = vld [vmem:[%s3655_s2 + $0x528] sm:$0xff]  ;;  %v200_v3 = vld [vmem:[%s3655_s2 + $0x500] sm:$0xff] }
  0x37   :  { %1706 = vmatpush1.bf16.msra.mxu1 %v1705_v40  ;;  %1516 = vmatprep.subr.bf16.mxu0 %v1515_v41  ;;  %v1533_v40 = vpack.c.bf16 %v180_v11, %v176_v31  ;;  %v1725_v41 = vpack.c.bf16 %v182_v34, %v178_v32  ;;  %v1727_v46 = vpack.c.bf16 %v191_v39, %v187_v38  ;;  %v203_v62 = vld [vmem:[%s3655_s2 + $0x518] sm:$0xff]  ;;  %v204_v4 = vld [vmem:[%s3655_s2 + $0x520] sm:$0xff]  ;;  %v202_v5 = vld [vmem:[%s3655_s2 + $0x510] sm:$0xff] }
  0x38   :  { %1708 = vmatprep.subr.bf16.mxu1 %v1707_v45  ;;  %v186_v45 = vld [vmem:[%s3655_s2 + $0x490] sm:$0xff]  ;;  %v207_v63 = vld [vmem:[%s3655_s2 + $0x538] sm:$0xff]  ;;  %v209_v8 = vld [vmem:[%s3655_s2 + $0x548] sm:$0xff]  ;;  %v1545_v13 = vpack.c.bf16 %v204_v4, %v200_v3 }
  0x39   :  { %v206_v7 = vld [vmem:[%s3655_s2 + $0x530] sm:$0xff]  ;;  %v213_v9 = vld [vmem:[%s3655_s2 + $0x568] sm:$0xff]  ;;  %v211_v10 = vld [vmem:[%s3655_s2 + $0x558] sm:$0xff] }
  0x3a   :  { %1518 = vmatpush1.bf16.msra.mxu0 %v1517_v51  ;;  %v1537_v51 = vpack.c.bf16 %v188_v44, %v184_v43  ;;  %v215_v12 = vld [vmem:[%s3655_s2 + $0x578] sm:$0xff]  ;;  %v212_v17 = vld [vmem:[%s3655_s2 + $0x560] sm:$0xff]  ;;  %v210_v18 = vld [vmem:[%s3655_s2 + $0x550] sm:$0xff] }
  0x3b   :  { %1710 = vmatpush1.bf16.msra.mxu1 %v1709_v52  ;;  %1520 = vmatprep.subr.bf16.mxu0 %v1519_v53  ;;  %v1539_v53 = vpack.c.bf16 %v197_v48, %v193_v47  ;;  %v1739_v19 = vpack.c.bf16 %v215_v12, %v211_v10  ;;  %v217_v21 = vld [vmem:[%s3655_s2 + $0x588] sm:$0xff]  ;;  %v219_v23 = vld [vmem:[%s3655_s2 + $0x598] sm:$0xff]  ;;  %v220_v31 = vld [vmem:[%s3655_s2 + $0x5a0] sm:$0xff] }
  0x3c   :  { %1712 = vmatprep.subr.bf16.mxu1 %v1711_v57  ;;  %v1731_v57 = vpack.c.bf16 %v199_v50, %v195_v49  ;;  %v221_v22 = vld [vmem:[%s3655_s2 + $0x5a8] sm:$0xff]  ;;  %v223_v26 = vld [vmem:[%s3655_s2 + $0x5b8] sm:$0xff]  ;;  %v218_v11 = vld [vmem:[%s3655_s2 + $0x590] sm:$0xff] }
  0x3d   :  { %v1743_v32 = vpack.c.bf16 %v223_v26, %v219_v23  ;;  %v225_v34 = vld [vmem:[%s3655_s2 + $0x5c8] sm:$0xff]  ;;  %v227_v36 = vld [vmem:[%s3655_s2 + $0x5d8] sm:$0xff]  ;;  %v226_v43 = vld [vmem:[%s3655_s2 + $0x5d0] sm:$0xff] }
  0x3e   :  { %1522 = vmatpush1.bf16.msra.mxu0 %v1521_v0  ;;  %v1541_v0 = vpack.c.bf16 %v196_v55, %v192_v54  ;;  %v229_v35 = vld [vmem:[%s3655_s2 + $0x5e8] sm:$0xff]  ;;  %v235_v47 = vld [vmem:[%s3655_s2 + $0x618] sm:$0xff]  ;;  %v234_v54 = vld [vmem:[%s3655_s2 + $0x610] sm:$0xff] }
  0x3f   :  { %1714 = vmatpush1.bf16.msra.mxu1 %v1713_v1  ;;  %1524 = vmatprep.subr.bf16.mxu0 %v1523_v2  ;;  %v1733_v1 = vpack.c.bf16 %v198_v58, %v194_v56  ;;  %v1543_v2 = vpack.c.bf16 %v205_v60, %v201_v59  ;;  %v239_v48 = vld [vmem:[%s3655_s2 + $0x638] sm:$0xff]  ;;  %v238_v56 = vld [vmem:[%s3655_s2 + $0x630] sm:$0xff]  ;;  %v245_v58 = vld [vmem:[%s3655_s2 + $0x668] sm:$0xff] }
  0x40   :  { %1716 = vmatprep.subr.bf16.mxu1 %v1715_v6  ;;  %v1735_v6 = vpack.c.bf16 %v207_v63, %v203_v62  ;;  %v1751_v55 = vpack.c.bf16 %v239_v48, %v235_v47  ;;  %v243_v59 = vld [vmem:[%s3655_s2 + $0x658] sm:$0xff]  ;;  %v1753_v63 = vpack.c.bf16 %v238_v56, %v234_v54  ;;  %v242_v3 = vld [vmem:[%s3655_s2 + $0x650] sm:$0xff]  ;;  %v285_v56 = vld [vmem:[%s3655_s2 + $0x7a8] sm:$0xff] }
  0x41   :  { %v247_v60 = vld [vmem:[%s3655_s2 + $0x678] sm:$0xff]  ;;  %v278_v54 = vld [vmem:[%s3655_s2 + $0x770] sm:$0xff] }
  0x42   :  { %1526 = vmatpush1.bf16.msra.mxu0 %v1525_v14  ;;  %v1737_v14 = vpack.c.bf16 %v206_v7, %v202_v5  ;;  %v1755_v4 = vpack.c.bf16 %v247_v60, %v243_v59  ;;  %v246_v5 = vld [vmem:[%s3655_s2 + $0x670] sm:$0xff]  ;;  %v253_v7 = vld [vmem:[%s3655_s2 + $0x6a8] sm:$0xff] }
  0x43   :  { %1718 = vmatpush1.bf16.msra.mxu1 %v1717_v15  ;;  %1528 = vmatprep.subr.bf16.mxu0 %v1527_v16  ;;  %v1547_v15 = vpack.c.bf16 %v213_v9, %v209_v8  ;;  %v208_v16 = vld [vmem:[%s3655_s2 + $0x540] sm:$0xff]  ;;  %v251_v8 = vld [vmem:[%s3655_s2 + $0x698] sm:$0xff]  ;;  %v1757_v12 = vpack.c.bf16 %v246_v5, %v242_v3  ;;  %v286_v3 = vld [vmem:[%s3655_s2 + $0x7b0] sm:$0xff] }
  0x44   :  { %1720 = vmatprep.subr.bf16.mxu1 %v1719_v20  ;;  %v214_v20 = vld [vmem:[%s3655_s2 + $0x570] sm:$0xff]  ;;  %v1549_v27 = vpack.c.bf16 %v212_v17, %v208_v16  ;;  %v255_v9 = vld [vmem:[%s3655_s2 + $0x6b8] sm:$0xff]  ;;  %v293_v5 = vld [vmem:[%s3655_s2 + $0x7e8] sm:$0xff] }
  0x45   :  { %544 = vmatmul.mubr.f32.vlgmr.msra.gmra.mrb[0].mxu0 %v2373_v25  ;;  %v250_v16 = vld [vmem:[%s3655_s2 + $0x690] sm:$0xff]  ;;  %v1759_v17 = vpack.c.bf16 %v255_v9, %v251_v8 }
  0x46   :  { %1530 = vmatpush1.bf16.msra.mxu0 %v1529_v28  ;;  %757 = vmatmul.mubr.f32.vlgmr.msra.gmra.mrb[0].mxu1 %v2373_v25  ;;  %v190_v25 = vld [vmem:[%s3655_s2 + $0x4b0] sm:$0xff]  ;;  %v1741_v28 = vpack.c.bf16 %v214_v20, %v210_v18  ;;  %v261_v20 = vld [vmem:[%s3655_s2 + $0x6e8] sm:$0xff] }
  0x47   :  { %1722 = vmatpush1.bf16.msra.mxu1 %v1721_v29  ;;  %1532 = vmatprep.subr.bf16.mxu0 %v1531_v30  ;;  %v1729_v52 = vpack.c.bf16 %v190_v25, %v186_v45  ;;  %v1551_v29 = vpack.c.bf16 %v221_v22, %v217_v21  ;;  %v216_v30 = vld [vmem:[%s3655_s2 + $0x580] sm:$0xff]  ;;  %v230_v45 = vld [vmem:[%s3655_s2 + $0x5f0] sm:$0xff]  ;;  %v237_v25 = vld [vmem:[%s3655_s2 + $0x628] sm:$0xff] }
  0x48   :  { %1724 = vmatprep.subr.bf16.mxu1 %v1723_v33  ;;  %614 = vmatprep.mubr.f32.mxu0 %v464_v37  ;;  %v222_v33 = vld [vmem:[%s3655_s2 + $0x5b0] sm:$0xff]  ;;  %v1553_v38 = vpack.c.bf16 %v220_v31, %v216_v30  ;;  %v1749_v50 = vpack.c.bf16 %v230_v45, %v226_v43  ;;  %v259_v21 = vld [vmem:[%s3655_s2 + $0x6d8] sm:$0xff]  ;;  %v277_v45 = vld [vmem:[%s3655_s2 + $0x768] sm:$0xff] }
  0x49   :  { %827 = vmatprep.mubr.f32.mxu1 %v464_v37  ;;  %v231_v37 = vld [vmem:[%s3655_s2 + $0x5f8] sm:$0xff]  ;;  %v1745_v39 = vpack.c.bf16 %v222_v33, %v218_v11  ;;  %v254_v18 = vld [vmem:[%s3655_s2 + $0x6b0] sm:$0xff]  ;;  %v269_v33 = vld [vmem:[%s3655_s2 + $0x728] sm:$0xff] }
  0x4a   :  { %1534 = vmatpush1.bf16.msra.mxu0 %v1533_v40  ;;  %v1555_v40 = vpack.c.bf16 %v229_v35, %v225_v34  ;;  %v1747_v44 = vpack.c.bf16 %v231_v37, %v227_v36  ;;  %v263_v22 = vld [vmem:[%s3655_s2 + $0x6f8] sm:$0xff]  ;;  %v1761_v26 = vpack.c.bf16 %v254_v18, %v250_v16  ;;  %v258_v30 = vld [vmem:[%s3655_s2 + $0x6d0] sm:$0xff]  ;;  %v301_v18 = vld [vmem:[%s3655_s2 + $0x828] sm:$0xff] }
  0x4b   :  { %1726 = vmatpush1.bf16.msra.mxu1 %v1725_v41  ;;  %1536 = vmatprep.subr.bf16.mxu0 %v1535_v42  ;;  %v224_v41 = vld [vmem:[%s3655_s2 + $0x5c0] sm:$0xff]  ;;  %v1763_v31 = vpack.c.bf16 %v263_v22, %v259_v21  ;;  %v262_v11 = vld [vmem:[%s3655_s2 + $0x6f0] sm:$0xff]  ;;  %v267_v34 = vld [vmem:[%s3655_s2 + $0x718] sm:$0xff] }
  0x4c   :  { %1728 = vmatprep.subr.bf16.mxu1 %v1727_v46  ;;  %v228_v42 = vld [vmem:[%s3655_s2 + $0x5e0] sm:$0xff]  ;;  %v233_v46 = vld [vmem:[%s3655_s2 + $0x608] sm:$0xff]  ;;  %v271_v35 = vld [vmem:[%s3655_s2 + $0x738] sm:$0xff]  ;;  %v1765_v37 = vpack.c.bf16 %v262_v11, %v258_v30 }
  0x4d   :  { %v1557_v49 = vpack.c.bf16 %v228_v42, %v224_v41  ;;  %v266_v41 = vld [vmem:[%s3655_s2 + $0x710] sm:$0xff]  ;;  %v1767_v42 = vpack.c.bf16 %v271_v35, %v267_v34  ;;  %v309_v11 = vld [vmem:[%s3655_s2 + $0x868] sm:$0xff] }
  0x4e   :  { %1538 = vmatpush1.bf16.msra.mxu0 %v1537_v51  ;;  %v1559_v51 = vpack.c.bf16 %v237_v25, %v233_v46  ;;  %v270_v43 = vld [vmem:[%s3655_s2 + $0x730] sm:$0xff]  ;;  %v275_v46 = vld [vmem:[%s3655_s2 + $0x758] sm:$0xff]  ;;  %v2893_v35 = vld.sshfl [vmem:[%s3656_s0 + $0x8] sm:$0x33 pattern:$0x76325410] }
  0x4f   :  { %1730 = vmatpush1.bf16.msra.mxu1 %v1729_v52  ;;  %1540 = vmatprep.subr.bf16.mxu0 %v1539_v53  ;;  %v232_v52 = vld [vmem:[%s3655_s2 + $0x600] sm:$0xff]  ;;  %v279_v25 = vld [vmem:[%s3655_s2 + $0x778] sm:$0xff]  ;;  %v1769_v48 = vpack.c.bf16 %v270_v43, %v266_v41  ;;  %v294_v16 = vld [vmem:[%s3655_s2 + $0x7f0] sm:$0xff] }
  0x50   :  { %1732 = vmatprep.subr.bf16.mxu1 %v1731_v57  ;;  %v236_v53 = vld [vmem:[%s3655_s2 + $0x620] sm:$0xff]  ;;  %v241_v57 = vld [vmem:[%s3655_s2 + $0x648] sm:$0xff]  ;;  %v302_v30 = vld [vmem:[%s3655_s2 + $0x830] sm:$0xff] }
  0x51   :  { %v1561_v62 = vpack.c.bf16 %v236_v53, %v232_v52  ;;  %v274_v52 = vld [vmem:[%s3655_s2 + $0x750] sm:$0xff]  ;;  %v1771_v53 = vpack.c.bf16 %v279_v25, %v275_v46  ;;  %v313_v43 = vld [vmem:[%s3655_s2 + $0x888] sm:$0xff]  ;;  %v315_v46 = vld [vmem:[%s3655_s2 + $0x898] sm:$0xff] }
  0x52   :  { %1542 = vmatpush1.bf16.msra.mxu0 %v1541_v0  ;;  %v1563_v0 = vpack.c.bf16 %v245_v58, %v241_v57  ;;  %v283_v57 = vld [vmem:[%s3655_s2 + $0x798] sm:$0xff]  ;;  %v1773_v60 = vpack.c.bf16 %v278_v54, %v274_v52  ;;  %v314_v52 = vld [vmem:[%s3655_s2 + $0x890] sm:$0xff]  ;;  %v321_v54 = vld [vmem:[%s3655_s2 + $0x8c8] sm:$0xff] }
  0x53   :  { %1734 = vmatpush1.bf16.msra.mxu1 %v1733_v1  ;;  %1544 = vmatprep.subr.bf16.mxu0 %v1543_v2  ;;  %v240_v1 = vld [vmem:[%s3655_s2 + $0x640] sm:$0xff]  ;;  %v287_v58 = vld [vmem:[%s3655_s2 + $0x7b8] sm:$0xff] }
  0x54   :  { %1736 = vmatprep.subr.bf16.mxu1 %v1735_v6  ;;  %v244_v2 = vld [vmem:[%s3655_s2 + $0x660] sm:$0xff]  ;;  %v249_v6 = vld [vmem:[%s3655_s2 + $0x688] sm:$0xff]  ;;  %v319_v25 = vld [vmem:[%s3655_s2 + $0x8b8] sm:$0xff] }
  0x55   :  { %v1565_v10 = vpack.c.bf16 %v244_v2, %v240_v1  ;;  %v282_v1 = vld [vmem:[%s3655_s2 + $0x790] sm:$0xff]  ;;  %v1775_v2 = vpack.c.bf16 %v287_v58, %v283_v57  ;;  %v327_v57 = vld [vmem:[%s3655_s2 + $0x8f8] sm:$0xff] }
  0x56   :  { %1546 = vmatpush1.bf16.msra.mxu0 %v1545_v13  ;;  %v1567_v13 = vpack.c.bf16 %v253_v7, %v249_v6  ;;  %v291_v6 = vld [vmem:[%s3655_s2 + $0x7d8] sm:$0xff]  ;;  %v1777_v9 = vpack.c.bf16 %v286_v3, %v282_v1  ;;  %v329_v3 = vld [vmem:[%s3655_s2 + $0x908] sm:$0xff] }
  0x57   :  { %1738 = vmatpush1.bf16.msra.mxu1 %v1737_v14  ;;  %1548 = vmatprep.subr.bf16.mxu0 %v1547_v15  ;;  %v248_v14 = vld [vmem:[%s3655_s2 + $0x680] sm:$0xff]  ;;  %v295_v7 = vld [vmem:[%s3655_s2 + $0x7f8] sm:$0xff] }
  0x58   :  { %1740 = vmatprep.subr.bf16.mxu1 %v1739_v19  ;;  %v252_v15 = vld [vmem:[%s3655_s2 + $0x6a0] sm:$0xff]  ;;  %v257_v19 = vld [vmem:[%s3655_s2 + $0x6c8] sm:$0xff] }
  0x59   :  { %v1569_v23 = vpack.c.bf16 %v252_v15, %v248_v14  ;;  %v290_v14 = vld [vmem:[%s3655_s2 + $0x7d0] sm:$0xff]  ;;  %v1779_v15 = vpack.c.bf16 %v295_v7, %v291_v6  ;;  %v335_v6 = vld [vmem:[%s3655_s2 + $0x938] sm:$0xff] }
  0x5a   :  { %1550 = vmatpush1.bf16.msra.mxu0 %v1549_v27  ;;  %v1571_v27 = vpack.c.bf16 %v261_v20, %v257_v19  ;;  %v299_v19 = vld [vmem:[%s3655_s2 + $0x818] sm:$0xff]  ;;  %v1781_v22 = vpack.c.bf16 %v294_v16, %v290_v14  ;;  %v337_v16 = vld [vmem:[%s3655_s2 + $0x948] sm:$0xff] }
  0x5b   :  { %1742 = vmatpush1.bf16.msra.mxu1 %v1741_v28  ;;  %1552 = vmatprep.subr.bf16.mxu0 %v1551_v29  ;;  %v256_v28 = vld [vmem:[%s3655_s2 + $0x6c0] sm:$0xff]  ;;  %v303_v20 = vld [vmem:[%s3655_s2 + $0x838] sm:$0xff] }
  0x5c   :  { %1744 = vmatprep.subr.bf16.mxu1 %v1743_v32  ;;  %v260_v29 = vld [vmem:[%s3655_s2 + $0x6e0] sm:$0xff]  ;;  %v265_v32 = vld [vmem:[%s3655_s2 + $0x708] sm:$0xff] }
  0x5d   :  { %v1573_v36 = vpack.c.bf16 %v260_v29, %v256_v28  ;;  %v298_v28 = vld [vmem:[%s3655_s2 + $0x810] sm:$0xff]  ;;  %v1783_v29 = vpack.c.bf16 %v303_v20, %v299_v19  ;;  %v343_v19 = vld [vmem:[%s3655_s2 + $0x978] sm:$0xff] }
  0x5e   :  { %1554 = vmatpush1.bf16.msra.mxu0 %v1553_v38  ;;  %v1575_v38 = vpack.c.bf16 %v269_v33, %v265_v32  ;;  %v307_v32 = vld [vmem:[%s3655_s2 + $0x858] sm:$0xff] }
  0x5f   :  { %1746 = vmatpush1.bf16.msra.mxu1 %v1745_v39  ;;  %1556 = vmatprep.subr.bf16.mxu0 %v1555_v40  ;;  %v264_v39 = vld [vmem:[%s3655_s2 + $0x700] sm:$0xff]  ;;  %v311_v33 = vld [vmem:[%s3655_s2 + $0x878] sm:$0xff] }
  0x60   :  { %1748 = vmatprep.subr.bf16.mxu1 %v1747_v44  ;;  %v268_v40 = vld [vmem:[%s3655_s2 + $0x720] sm:$0xff]  ;;  %v273_v44 = vld [vmem:[%s3655_s2 + $0x748] sm:$0xff]  ;;  %v1787_v41 = vpack.c.bf16 %v311_v33, %v307_v32  ;;  %v351_v32 = vld [vmem:[%s3655_s2 + $0x9b8] sm:$0xff] }
  0x61   :  { %v1577_v47 = vpack.c.bf16 %v268_v40, %v264_v39  ;;  %v308_v39 = vld [vmem:[%s3655_s2 + $0x860] sm:$0xff]  ;;  %v306_v40 = vld [vmem:[%s3655_s2 + $0x850] sm:$0xff] }
  0x62   :  { %1558 = vmatpush1.bf16.msra.mxu0 %v1557_v49  ;;  %v1579_v49 = vpack.c.bf16 %v277_v45, %v273_v44  ;;  %v317_v44 = vld [vmem:[%s3655_s2 + $0x8a8] sm:$0xff]  ;;  %v472_v45 = vcombine.high %v2893_v35, %v2893_v35 }
  0x63   :  { %1750 = vmatpush1.bf16.msra.mxu1 %v1749_v50  ;;  %1560 = vmatprep.subr.bf16.mxu0 %v1559_v51  ;;  %v272_v50 = vld [vmem:[%s3655_s2 + $0x740] sm:$0xff] }
  0x64   :  { %1752 = vmatprep.subr.bf16.mxu1 %v1751_v55  ;;  %v276_v51 = vld [vmem:[%s3655_s2 + $0x760] sm:$0xff]  ;;  %v281_v55 = vld [vmem:[%s3655_s2 + $0x788] sm:$0xff] }
  0x65   :  { %v1581_v59 = vpack.c.bf16 %v276_v51, %v272_v50  ;;  %v312_v50 = vld [vmem:[%s3655_s2 + $0x880] sm:$0xff] }
  0x66   :  { %1562 = vmatpush1.bf16.msra.mxu0 %v1561_v62  ;;  %v1583_v62 = vpack.c.bf16 %v285_v56, %v281_v55  ;;  %v316_v51 = vld [vmem:[%s3655_s2 + $0x8a0] sm:$0xff]  ;;  %v325_v55 = vld [vmem:[%s3655_s2 + $0x8e8] sm:$0xff]  ;;  %v323_v56 = vld [vmem:[%s3655_s2 + $0x8d8] sm:$0xff] }
  0x67   :  { %1754 = vmatpush1.bf16.msra.mxu1 %v1753_v63  ;;  %1564 = vmatprep.subr.bf16.mxu0 %v1563_v0  ;;  %v280_v63 = vld [vmem:[%s3655_s2 + $0x780] sm:$0xff]  ;;  %v1601_v58 = vpack.c.bf16 %v316_v51, %v312_v50  ;;  %v1795_v1 = vpack.c.bf16 %v327_v57, %v323_v56  ;;  %v354_v50 = vld [vmem:[%s3655_s2 + $0x9d0] sm:$0xff] }
  0x68   :  { %1756 = vmatprep.subr.bf16.mxu1 %v1755_v4  ;;  %v284_v0 = vld [vmem:[%s3655_s2 + $0x7a0] sm:$0xff]  ;;  %v289_v4 = vld [vmem:[%s3655_s2 + $0x7c8] sm:$0xff] }
  0x69   :  { %v1585_v8 = vpack.c.bf16 %v284_v0, %v280_v63  ;;  %v324_v63 = vld [vmem:[%s3655_s2 + $0x8e0] sm:$0xff]  ;;  %v322_v0 = vld [vmem:[%s3655_s2 + $0x8d0] sm:$0xff] }
  0x6a   :  { %1566 = vmatpush1.bf16.msra.mxu0 %v1565_v10  ;;  %v1587_v10 = vpack.c.bf16 %v293_v5, %v289_v4  ;;  %v333_v4 = vld [vmem:[%s3655_s2 + $0x928] sm:$0xff]  ;;  %v331_v5 = vld [vmem:[%s3655_s2 + $0x918] sm:$0xff] }
  0x6b   :  { %1758 = vmatpush1.bf16.msra.mxu1 %v1757_v12  ;;  %1568 = vmatprep.subr.bf16.mxu0 %v1567_v13  ;;  %v288_v12 = vld [vmem:[%s3655_s2 + $0x7c0] sm:$0xff]  ;;  %v1799_v14 = vpack.c.bf16 %v335_v6, %v331_v5 }
  0x6c   :  { %1760 = vmatprep.subr.bf16.mxu1 %v1759_v17  ;;  %v292_v13 = vld [vmem:[%s3655_s2 + $0x7e0] sm:$0xff]  ;;  %v297_v17 = vld [vmem:[%s3655_s2 + $0x808] sm:$0xff] }
  0x6d   :  { %v1589_v21 = vpack.c.bf16 %v292_v13, %v288_v12  ;;  %v332_v12 = vld [vmem:[%s3655_s2 + $0x920] sm:$0xff]  ;;  %v330_v13 = vld [vmem:[%s3655_s2 + $0x910] sm:$0xff] }
  0x6e   :  { %1570 = vmatpush1.bf16.msra.mxu0 %v1569_v23  ;;  %v1591_v23 = vpack.c.bf16 %v301_v18, %v297_v17  ;;  %v341_v17 = vld [vmem:[%s3655_s2 + $0x968] sm:$0xff]  ;;  %v339_v18 = vld [vmem:[%s3655_s2 + $0x958] sm:$0xff] }
  0x6f   :  { %1762 = vmatpush1.bf16.msra.mxu1 %v1761_v26  ;;  %1572 = vmatprep.subr.bf16.mxu0 %v1571_v27  ;;  %v296_v26 = vld [vmem:[%s3655_s2 + $0x800] sm:$0xff] }
  0x70   :  { %1764 = vmatprep.subr.bf16.mxu1 %v1763_v31  ;;  %v300_v27 = vld [vmem:[%s3655_s2 + $0x820] sm:$0xff]  ;;  %v305_v31 = vld [vmem:[%s3655_s2 + $0x848] sm:$0xff] }
  0x71   :  { %v1593_v34 = vpack.c.bf16 %v300_v27, %v296_v26  ;;  %v340_v26 = vld [vmem:[%s3655_s2 + $0x960] sm:$0xff]  ;;  %v338_v27 = vld [vmem:[%s3655_s2 + $0x950] sm:$0xff] }
  0x72   :  { %1574 = vmatpush1.bf16.msra.mxu0 %v1573_v36  ;;  %v1785_v36 = vpack.c.bf16 %v302_v30, %v298_v28  ;;  %v1803_v28 = vpack.c.bf16 %v343_v19, %v339_v18  ;;  %v345_v30 = vld [vmem:[%s3655_s2 + $0x988] sm:$0xff] }
  0x73   :  { %1766 = vmatpush1.bf16.msra.mxu1 %v1765_v37  ;;  %1576 = vmatprep.subr.bf16.mxu0 %v1575_v38  ;;  %v1595_v37 = vpack.c.bf16 %v309_v11, %v305_v31  ;;  %v304_v38 = vld [vmem:[%s3655_s2 + $0x840] sm:$0xff]  ;;  %v349_v31 = vld [vmem:[%s3655_s2 + $0x9a8] sm:$0xff]  ;;  %v347_v11 = vld [vmem:[%s3655_s2 + $0x998] sm:$0xff] }
  0x74   :  { %1768 = vmatprep.subr.bf16.mxu1 %v1767_v42  ;;  %v310_v42 = vld [vmem:[%s3655_s2 + $0x870] sm:$0xff] }
  0x76   :  { %1578 = vmatpush1.bf16.msra.mxu0 %v1577_v47  ;;  %v1597_v47 = vpack.c.bf16 %v308_v39, %v304_v38  ;;  %v348_v38 = vld [vmem:[%s3655_s2 + $0x9a0] sm:$0xff]  ;;  %v346_v39 = vld [vmem:[%s3655_s2 + $0x990] sm:$0xff] }
  0x77   :  { %1770 = vmatpush1.bf16.msra.mxu1 %v1769_v48  ;;  %1580 = vmatprep.subr.bf16.mxu0 %v1579_v49  ;;  %v1789_v48 = vpack.c.bf16 %v310_v42, %v306_v40  ;;  %v1599_v49 = vpack.c.bf16 %v317_v44, %v313_v43  ;;  %v1807_v40 = vpack.c.bf16 %v351_v32, %v347_v11  ;;  %v353_v42 = vld [vmem:[%s3655_s2 + $0x9c8] sm:$0xff]  ;;  %v355_v44 = vld [vmem:[%s3655_s2 + $0x9d8] sm:$0xff] }
  0x78   :  { %1772 = vmatprep.subr.bf16.mxu1 %v1771_v53  ;;  %v1791_v53 = vpack.c.bf16 %v319_v25, %v315_v46  ;;  %v357_v43 = vld [vmem:[%s3655_s2 + $0x9e8] sm:$0xff] }
  0x7a   :  { %1582 = vmatpush1.bf16.msra.mxu0 %v1581_v59 }
  0x7b   :  { %1774 = vmatpush1.bf16.msra.mxu1 %v1773_v60  ;;  %1584 = vmatprep.subr.bf16.mxu0 %v1583_v62  ;;  %v1603_v60 = vpack.c.bf16 %v325_v55, %v321_v54  ;;  %v320_v62 = vld [vmem:[%s3655_s2 + $0x8c0] sm:$0xff]  ;;  %v363_v54 = vld [vmem:[%s3655_s2 + $0xa18] sm:$0xff] }
  0x7c   :  { %1776 = vmatprep.subr.bf16.mxu1 %v1775_v2  ;;  %v326_v2 = vld [vmem:[%s3655_s2 + $0x8f0] sm:$0xff]  ;;  %v1605_v7 = vpack.c.bf16 %v324_v63, %v320_v62  ;;  %v367_v55 = vld [vmem:[%s3655_s2 + $0xa38] sm:$0xff] }
  0x7d   :  { %v362_v62 = vld [vmem:[%s3655_s2 + $0xa10] sm:$0xff]  ;;  %v1815_v63 = vpack.c.bf16 %v367_v55, %v363_v54 }
  0x7e   :  { %1586 = vmatpush1.bf16.msra.mxu0 %v1585_v8  ;;  %v1797_v8 = vpack.c.bf16 %v326_v2, %v322_v0  ;;  %v366_v0 = vld [vmem:[%s3655_s2 + $0xa30] sm:$0xff]  ;;  %v373_v2 = vld [vmem:[%s3655_s2 + $0xa68] sm:$0xff] }
  0x7f   :  { %1778 = vmatpush1.bf16.msra.mxu1 %v1777_v9  ;;  %1588 = vmatprep.subr.bf16.mxu0 %v1587_v10  ;;  %v1607_v9 = vpack.c.bf16 %v333_v4, %v329_v3  ;;  %v328_v10 = vld [vmem:[%s3655_s2 + $0x900] sm:$0xff]  ;;  %v371_v3 = vld [vmem:[%s3655_s2 + $0xa58] sm:$0xff]  ;;  %v1817_v6 = vpack.c.bf16 %v366_v0, %v362_v62  ;;  %v406_v62 = vld [vmem:[%s3655_s2 + $0xb70] sm:$0xff] }
  0x80   :  { %1780 = vmatprep.subr.bf16.mxu1 %v1779_v15  ;;  %v334_v15 = vld [vmem:[%s3655_s2 + $0x930] sm:$0xff]  ;;  %v1609_v20 = vpack.c.bf16 %v332_v12, %v328_v10  ;;  %v375_v4 = vld [vmem:[%s3655_s2 + $0xa78] sm:$0xff]  ;;  %v413_v0 = vld [vmem:[%s3655_s2 + $0xba8] sm:$0xff] }
  0x81   :  { %v370_v10 = vld [vmem:[%s3655_s2 + $0xa50] sm:$0xff]  ;;  %v1819_v12 = vpack.c.bf16 %v375_v4, %v371_v3 }
  0x82   :  { %1590 = vmatpush1.bf16.msra.mxu0 %v1589_v21  ;;  %v1801_v21 = vpack.c.bf16 %v334_v15, %v330_v13  ;;  %v374_v13 = vld [vmem:[%s3655_s2 + $0xa70] sm:$0xff]  ;;  %v381_v15 = vld [vmem:[%s3655_s2 + $0xaa8] sm:$0xff] }
  0x83   :  { %1782 = vmatpush1.bf16.msra.mxu1 %v1781_v22  ;;  %1592 = vmatprep.subr.bf16.mxu0 %v1591_v23  ;;  %v1611_v22 = vpack.c.bf16 %v341_v17, %v337_v16  ;;  %v336_v23 = vld [vmem:[%s3655_s2 + $0x940] sm:$0xff]  ;;  %v379_v16 = vld [vmem:[%s3655_s2 + $0xa98] sm:$0xff]  ;;  %v1821_v19 = vpack.c.bf16 %v374_v13, %v370_v10  ;;  %v414_v10 = vld [vmem:[%s3655_s2 + $0xbb0] sm:$0xff] }
  0x84   :  { %1784 = vmatprep.subr.bf16.mxu1 %v1783_v29  ;;  %v342_v29 = vld [vmem:[%s3655_s2 + $0x970] sm:$0xff]  ;;  %v1613_v33 = vpack.c.bf16 %v340_v26, %v336_v23  ;;  %v383_v17 = vld [vmem:[%s3655_s2 + $0xab8] sm:$0xff]  ;;  %v421_v13 = vld [vmem:[%s3655_s2 + $0xbe8] sm:$0xff] }
  0x85   :  { %615 = vmatmul.mubr.f32.vlgmr.msra.gmra.mrb[0].mxu0 %v2494_v24  ;;  %v378_v23 = vld [vmem:[%s3655_s2 + $0xa90] sm:$0xff]  ;;  %v1823_v26 = vpack.c.bf16 %v383_v17, %v379_v16 }
  0x86   :  { %1594 = vmatpush1.bf16.msra.mxu0 %v1593_v34  ;;  %828 = vmatmul.mubr.f32.vlgmr.msra.gmra.mrb[0].mxu1 %v2494_v24  ;;  %v318_v24 = vld [vmem:[%s3655_s2 + $0x8b0] sm:$0xff]  ;;  %v1805_v34 = vpack.c.bf16 %v342_v29, %v338_v27  ;;  %v389_v29 = vld [vmem:[%s3655_s2 + $0xae8] sm:$0xff] }
  0x87   :  { %1786 = vmatpush1.bf16.msra.mxu1 %v1785_v36  ;;  %1596 = vmatprep.subr.bf16.mxu0 %v1595_v37  ;;  %v1793_v59 = vpack.c.bf16 %v318_v24, %v314_v52  ;;  %v1615_v36 = vpack.c.bf16 %v349_v31, %v345_v30  ;;  %v344_v37 = vld [vmem:[%s3655_s2 + $0x980] sm:$0xff]  ;;  %v358_v52 = vld [vmem:[%s3655_s2 + $0x9f0] sm:$0xff]  ;;  %v365_v24 = vld [vmem:[%s3655_s2 + $0xa28] sm:$0xff] }
  0x88   :  { %1788 = vmatprep.subr.bf16.mxu1 %v1787_v41  ;;  %685 = vmatprep.mubr.f32.mxu0 %v472_v45  ;;  %v350_v41 = vld [vmem:[%s3655_s2 + $0x9b0] sm:$0xff]  ;;  %v1617_v46 = vpack.c.bf16 %v348_v38, %v344_v37  ;;  %v1813_v57 = vpack.c.bf16 %v358_v52, %v354_v50  ;;  %v387_v30 = vld [vmem:[%s3655_s2 + $0xad8] sm:$0xff]  ;;  %v405_v52 = vld [vmem:[%s3655_s2 + $0xb68] sm:$0xff] }
  0x89   :  { %898 = vmatprep.mubr.f32.mxu1 %v472_v45  ;;  %v359_v45 = vld [vmem:[%s3655_s2 + $0x9f8] sm:$0xff]  ;;  %v1809_v25 = vpack.c.bf16 %v350_v41, %v346_v39  ;;  %v382_v27 = vld [vmem:[%s3655_s2 + $0xab0] sm:$0xff]  ;;  %v397_v41 = vld [vmem:[%s3655_s2 + $0xb28] sm:$0xff] }
  0x8a   :  { %1598 = vmatpush1.bf16.msra.mxu0 %v1597_v47  ;;  %v1619_v47 = vpack.c.bf16 %v357_v43, %v353_v42  ;;  %v1811_v51 = vpack.c.bf16 %v359_v45, %v355_v44  ;;  %v391_v31 = vld [vmem:[%s3655_s2 + $0xaf8] sm:$0xff]  ;;  %v1825_v32 = vpack.c.bf16 %v382_v27, %v378_v23  ;;  %v386_v37 = vld [vmem:[%s3655_s2 + $0xad0] sm:$0xff] }
  0x8b   :  { %1790 = vmatpush1.bf16.msra.mxu1 %v1789_v48  ;;  %1600 = vmatprep.subr.bf16.mxu0 %v1599_v49  ;;  %v352_v48 = vld [vmem:[%s3655_s2 + $0x9c0] sm:$0xff]  ;;  %v1827_v38 = vpack.c.bf16 %v391_v31, %v387_v30  ;;  %v390_v39 = vld [vmem:[%s3655_s2 + $0xaf0] sm:$0xff]  ;;  %v395_v42 = vld [vmem:[%s3655_s2 + $0xb18] sm:$0xff] }
  0x8c   :  { %1792 = vmatprep.subr.bf16.mxu1 %v1791_v53  ;;  %v356_v49 = vld [vmem:[%s3655_s2 + $0x9e0] sm:$0xff]  ;;  %v361_v53 = vld [vmem:[%s3655_s2 + $0xa08] sm:$0xff]  ;;  %v399_v43 = vld [vmem:[%s3655_s2 + $0xb38] sm:$0xff]  ;;  %v1829_v45 = vpack.c.bf16 %v390_v39, %v386_v37 }
  0x8d   :  { %v1621_v56 = vpack.c.bf16 %v356_v49, %v352_v48  ;;  %v394_v48 = vld [vmem:[%s3655_s2 + $0xb10] sm:$0xff]  ;;  %v1831_v49 = vpack.c.bf16 %v399_v43, %v395_v42  ;;  %v912_v27 = vld [vmem:[%s3657_s4 + $0x18] sm:$0xff] }
  0x8e   :  { %1602 = vmatpush1.bf16.msra.mxu0 %v1601_v58  ;;  %v1623_v58 = vpack.c.bf16 %v365_v24, %v361_v53  ;;  %v398_v50 = vld [vmem:[%s3655_s2 + $0xb30] sm:$0xff]  ;;  %v403_v53 = vld [vmem:[%s3655_s2 + $0xb58] sm:$0xff] }
  0x8f   :  { %1794 = vmatpush1.bf16.msra.mxu1 %v1793_v59  ;;  %1604 = vmatprep.subr.bf16.mxu0 %v1603_v60  ;;  %v360_v59 = vld [vmem:[%s3655_s2 + $0xa00] sm:$0xff]  ;;  %v407_v24 = vld [vmem:[%s3655_s2 + $0xb78] sm:$0xff]  ;;  %v1833_v55 = vpack.c.bf16 %v398_v50, %v394_v48  ;;  %v422_v23 = vld [vmem:[%s3655_s2 + $0xbf0] sm:$0xff] }
  0x90   :  { %1796 = vmatprep.subr.bf16.mxu1 %v1795_v1  ;;  %v364_v60 = vld [vmem:[%s3655_s2 + $0xa20] sm:$0xff]  ;;  %v369_v1 = vld [vmem:[%s3655_s2 + $0xa48] sm:$0xff]  ;;  %v975_v39 = vld [vmem:[%s3657_s4 + $0x210] sm:$0xff] }
  0x91   :  { %v1625_v5 = vpack.c.bf16 %v364_v60, %v360_v59  ;;  %v402_v59 = vld [vmem:[%s3655_s2 + $0xb50] sm:$0xff]  ;;  %v1835_v60 = vpack.c.bf16 %v407_v24, %v403_v53 }
  0x92   :  { %1606 = vmatpush1.bf16.msra.mxu0 %v1605_v7  ;;  %v1627_v7 = vpack.c.bf16 %v373_v2, %v369_v1  ;;  %v411_v1 = vld [vmem:[%s3655_s2 + $0xb98] sm:$0xff]  ;;  %v1837_v4 = vpack.c.bf16 %v406_v62, %v402_v59  ;;  %v979_v50 = vld [vmem:[%s3657_s4 + $0x230] sm:$0xff]  ;;  %v981_v59 = vld [vmem:[%s3657_s4 + $0x240] sm:$0xff] }
  0x93   :  { %1798 = vmatpush1.bf16.msra.mxu1 %v1797_v8  ;;  %1608 = vmatprep.subr.bf16.mxu0 %v1607_v9  ;;  %v368_v8 = vld [vmem:[%s3655_s2 + $0xa40] sm:$0xff]  ;;  %v415_v2 = vld [vmem:[%s3655_s2 + $0xbb8] sm:$0xff]  ;;  %v986_v62 = vld [vmem:[%s3657_s4 + $0x268] sm:$0xff] }
  0x94   :  { %1800 = vmatprep.subr.bf16.mxu1 %v1799_v14  ;;  %v372_v9 = vld [vmem:[%s3655_s2 + $0xa60] sm:$0xff]  ;;  %v377_v14 = vld [vmem:[%s3655_s2 + $0xa88] sm:$0xff] }
  0x95   :  { %v1629_v18 = vpack.c.bf16 %v372_v9, %v368_v8  ;;  %v410_v8 = vld [vmem:[%s3655_s2 + $0xb90] sm:$0xff]  ;;  %v1839_v9 = vpack.c.bf16 %v415_v2, %v411_v1  ;;  %v921_v2 = vld [vmem:[%s3657_s4 + $0x60] sm:$0xff] }
  0x96   :  { %1610 = vmatpush1.bf16.msra.mxu0 %v1609_v20  ;;  %v1631_v20 = vpack.c.bf16 %v381_v15, %v377_v14  ;;  %v419_v14 = vld [vmem:[%s3655_s2 + $0xbd8] sm:$0xff]  ;;  %v1841_v17 = vpack.c.bf16 %v414_v10, %v410_v8  ;;  %v985_v8 = vld [vmem:[%s3657_s4 + $0x260] sm:$0xff]  ;;  %v990_v10 = vld [vmem:[%s3657_s4 + $0x288] sm:$0xff] }
  0x97   :  { %1802 = vmatpush1.bf16.msra.mxu1 %v1801_v21  ;;  %1612 = vmatprep.subr.bf16.mxu0 %v1611_v22  ;;  %v376_v21 = vld [vmem:[%s3655_s2 + $0xa80] sm:$0xff]  ;;  %v423_v15 = vld [vmem:[%s3655_s2 + $0xbf8] sm:$0xff] }
  0x98   :  { %1804 = vmatprep.subr.bf16.mxu1 %v1803_v28  ;;  %v380_v22 = vld [vmem:[%s3655_s2 + $0xaa0] sm:$0xff]  ;;  %v385_v28 = vld [vmem:[%s3655_s2 + $0xac8] sm:$0xff] }
  0x99   :  { %v1633_v11 = vpack.c.bf16 %v380_v22, %v376_v21  ;;  %v418_v21 = vld [vmem:[%s3655_s2 + $0xbd0] sm:$0xff]  ;;  %v1843_v22 = vpack.c.bf16 %v423_v15, %v419_v14  ;;  %v925_v15 = vld [vmem:[%s3657_s4 + $0x80] sm:$0xff] }
  0x9a   :  { %1614 = vmatpush1.bf16.msra.mxu0 %v1613_v33  ;;  %v1635_v33 = vpack.c.bf16 %v389_v29, %v385_v28  ;;  %v974_v28 = vld [vmem:[%s3657_s4 + $0x208] sm:$0xff]  ;;  %v976_v29 = vld [vmem:[%s3657_s4 + $0x218] sm:$0xff]  ;;  %v1845_v31 = vpack.c.bf16 %v422_v23, %v418_v21  ;;  %v989_v21 = vld [vmem:[%s3657_s4 + $0x280] sm:$0xff] }
  0x9b   :  { %1806 = vmatpush1.bf16.msra.mxu1 %v1805_v34  ;;  %1616 = vmatprep.subr.bf16.mxu0 %v1615_v36  ;;  %v384_v34 = vld [vmem:[%s3655_s2 + $0xac0] sm:$0xff]  ;;  %v1911_v37 = vpack.c.bf16 %v976_v29, %v974_v28  ;;  %v994_v23 = vld [vmem:[%s3657_s4 + $0x2a8] sm:$0xff] }
  0x9c   :  { %1808 = vmatprep.subr.bf16.mxu1 %v1807_v40  ;;  %v388_v36 = vld [vmem:[%s3655_s2 + $0xae0] sm:$0xff]  ;;  %v393_v40 = vld [vmem:[%s3655_s2 + $0xb08] sm:$0xff] }
  0x9d   :  { %v1637_v44 = vpack.c.bf16 %v388_v36, %v384_v34  ;;  %v914_v34 = vld [vmem:[%s3657_s4 + $0x28] sm:$0xff]  ;;  %v916_v36 = vld [vmem:[%s3657_s4 + $0x38] sm:$0xff]  ;;  %v929_v29 = vld [vmem:[%s3657_s4 + $0xa0] sm:$0xff] }
  0x9e   :  { %1618 = vmatpush1.bf16.msra.mxu0 %v1617_v46  ;;  %v1639_v46 = vpack.c.bf16 %v397_v41, %v393_v40  ;;  %v978_v40 = vld [vmem:[%s3657_s4 + $0x228] sm:$0xff]  ;;  %v980_v41 = vld [vmem:[%s3657_s4 + $0x238] sm:$0xff]  ;;  %v1851_v43 = vpack.c.bf16 %v916_v36, %v914_v34  ;;  %v993_v34 = vld [vmem:[%s3657_s4 + $0x2a0] sm:$0xff] }
  0x9f   :  { %1810 = vmatpush1.bf16.msra.mxu1 %v1809_v25  ;;  %1620 = vmatprep.subr.bf16.mxu0 %v1619_v47  ;;  %v392_v25 = vld [vmem:[%s3655_s2 + $0xb00] sm:$0xff]  ;;  %v1915_v48 = vpack.c.bf16 %v980_v41, %v978_v40  ;;  %v995_v36 = vld [vmem:[%s3657_s4 + $0x2b0] sm:$0xff] }
  0xa0   :  { %1812 = vmatprep.subr.bf16.mxu1 %v1811_v51  ;;  %v396_v47 = vld [vmem:[%s3655_s2 + $0xb20] sm:$0xff]  ;;  %v401_v51 = vld [vmem:[%s3655_s2 + $0xb48] sm:$0xff] }
  0xa1   :  { %v1641_v54 = vpack.c.bf16 %v396_v47, %v392_v25  ;;  %v920_v47 = vld [vmem:[%s3657_s4 + $0x58] sm:$0xff]  ;;  %v933_v41 = vld [vmem:[%s3657_s4 + $0xc0] sm:$0xff] }
  0xa2   :  { %1622 = vmatpush1.bf16.msra.mxu0 %v1621_v56  ;;  %v1643_v56 = vpack.c.bf16 %v405_v52, %v401_v51  ;;  %v982_v51 = vld [vmem:[%s3657_s4 + $0x248] sm:$0xff]  ;;  %v984_v52 = vld [vmem:[%s3657_s4 + $0x258] sm:$0xff] }
  0xa3   :  { %1814 = vmatpush1.bf16.msra.mxu1 %v1813_v57  ;;  %1624 = vmatprep.subr.bf16.mxu0 %v1623_v58  ;;  %v400_v57 = vld [vmem:[%s3655_s2 + $0xb40] sm:$0xff] }
  0xa4   :  { %1816 = vmatprep.subr.bf16.mxu1 %v1815_v63  ;;  %v404_v58 = vld [vmem:[%s3655_s2 + $0xb60] sm:$0xff]  ;;  %v409_v63 = vld [vmem:[%s3655_s2 + $0xb88] sm:$0xff] }
  0xa5   :  { %v1645_v3 = vpack.c.bf16 %v404_v58, %v400_v57  ;;  %v1919_v58 = vpack.c.bf16 %v984_v52, %v982_v51  ;;  %v939_v51 = vld [vmem:[%s3657_s4 + $0xf0] sm:$0xff] }
  0xa6   :  { %1626 = vmatpush1.bf16.msra.mxu0 %v1625_v5  ;;  %v1647_v5 = vpack.c.bf16 %v413_v0, %v409_v63  ;;  %v988_v63 = vld [vmem:[%s3657_s4 + $0x278] sm:$0xff] }
  0xa7   :  { %1818 = vmatpush1.bf16.msra.mxu1 %v1817_v6  ;;  %1628 = vmatprep.subr.bf16.mxu0 %v1627_v7  ;;  %v408_v6 = vld [vmem:[%s3655_s2 + $0xb80] sm:$0xff] }
  0xa8   :  { %1820 = vmatprep.subr.bf16.mxu1 %v1819_v12  ;;  %v412_v7 = vld [vmem:[%s3655_s2 + $0xba0] sm:$0xff]  ;;  %v417_v12 = vld [vmem:[%s3655_s2 + $0xbc8] sm:$0xff] }
  0xa9   :  { %v1649_v16 = vpack.c.bf16 %v412_v7, %v408_v6  ;;  %v928_v6 = vld [vmem:[%s3657_s4 + $0x98] sm:$0xff]  ;;  %v1923_v7 = vpack.c.bf16 %v988_v63, %v986_v62  ;;  %v945_v62 = vld [vmem:[%s3657_s4 + $0x120] sm:$0xff]  ;;  %v947_v63 = vld [vmem:[%s3657_s4 + $0x130] sm:$0xff] }
  0xaa   :  { %1630 = vmatpush1.bf16.msra.mxu0 %v1629_v18  ;;  %v1651_v18 = vpack.c.bf16 %v421_v13, %v417_v12  ;;  %v992_v12 = vld [vmem:[%s3657_s4 + $0x298] sm:$0xff] }
  0xab   :  { %1822 = vmatpush1.bf16.msra.mxu1 %v1821_v19  ;;  %1632 = vmatprep.subr.bf16.mxu0 %v1631_v20  ;;  %v416_v19 = vld [vmem:[%s3655_s2 + $0xbc0] sm:$0xff] }
  0xac   :  { %1824 = vmatprep.subr.bf16.mxu1 %v1823_v26  ;;  %v420_v20 = vld [vmem:[%s3655_s2 + $0xbe0] sm:$0xff]  ;;  %v910_v26 = vld [vmem:[%s3657_s4 + $0x8] sm:$0xff] }
  0xad   :  { %v1653_v30 = vpack.c.bf16 %v420_v20, %v416_v19  ;;  %v932_v19 = vld [vmem:[%s3657_s4 + $0xb8] sm:$0xff]  ;;  %v1927_v20 = vpack.c.bf16 %v992_v12, %v990_v10  ;;  %v953_v10 = vld [vmem:[%s3657_s4 + $0x160] sm:$0xff]  ;;  %v955_v12 = vld [vmem:[%s3657_s4 + $0x170] sm:$0xff] }
  0xae   :  { %1634 = vmatpush1.bf16.msra.mxu0 %v1633_v11  ;;  %v1847_v11 = vpack.c.bf16 %v912_v27, %v910_v26  ;;  %v996_v26 = vld [vmem:[%s3657_s4 + $0x2b8] sm:$0xff] }
  0xaf   :  { %1826 = vmatpush1.bf16.msra.mxu1 %v1825_v32  ;;  %1636 = vmatprep.subr.bf16.mxu0 %v1635_v33  ;;  %v909_v32 = vld [vmem:[%s3657_s4] sm:$0xff]  ;;  %v911_v33 = vld [vmem:[%s3657_s4 + $0x10] sm:$0xff] }
  0xb0   :  { %1828 = vmatprep.subr.bf16.mxu1 %v1827_v38  ;;  %v973_v38 = vld [vmem:[%s3657_s4 + $0x200] sm:$0xff]  ;;  %v1849_v42 = vpack.c.bf16 %v911_v33, %v909_v32  ;;  %v936_v32 = vld [vmem:[%s3657_s4 + $0xd8] sm:$0xff]  ;;  %v1931_v33 = vpack.c.bf16 %v996_v26, %v994_v23  ;;  %v963_v26 = vld [vmem:[%s3657_s4 + $0x1b0] sm:$0xff] }
  0xb1   :  { %v1913_v25 = vpack.c.bf16 %v975_v39, %v973_v38  ;;  %v1000_v38 = vld [vmem:[%s3657_s4 + $0x2d8] sm:$0xff]  ;;  %v961_v23 = vld [vmem:[%s3657_s4 + $0x1a0] sm:$0xff] }
  0xb2   :  { %1638 = vmatpush1.bf16.msra.mxu0 %v1637_v44  ;;  %v913_v44 = vld [vmem:[%s3657_s4 + $0x20] sm:$0xff] }
  0xb3   :  { %1830 = vmatpush1.bf16.msra.mxu1 %v1829_v45  ;;  %1640 = vmatprep.subr.bf16.mxu0 %v1639_v46  ;;  %v915_v45 = vld [vmem:[%s3657_s4 + $0x30] sm:$0xff]  ;;  %v918_v46 = vld [vmem:[%s3657_s4 + $0x48] sm:$0xff] }
  0xb4   :  { %1832 = vmatprep.subr.bf16.mxu1 %v1831_v49  ;;  %v977_v49 = vld [vmem:[%s3657_s4 + $0x220] sm:$0xff]  ;;  %v1853_v53 = vpack.c.bf16 %v915_v45, %v913_v44  ;;  %v1855_v24 = vpack.c.bf16 %v920_v47, %v918_v46  ;;  %v1933_v44 = vpack.c.bf16 %v995_v36, %v993_v34  ;;  %v940_v45 = vld [vmem:[%s3657_s4 + $0xf8] sm:$0xff]  ;;  %v999_v47 = vld [vmem:[%s3657_s4 + $0x2d0] sm:$0xff] }
  0xb5   :  { %v1917_v57 = vpack.c.bf16 %v979_v50, %v977_v49  ;;  %v937_v50 = vld [vmem:[%s3657_s4 + $0xe0] sm:$0xff]  ;;  %v1004_v34 = vld [vmem:[%s3657_s4 + $0x2f8] sm:$0xff] }
  0xb6   :  { %1642 = vmatpush1.bf16.msra.mxu0 %v1641_v54  ;;  %v917_v54 = vld [vmem:[%s3657_s4 + $0x40] sm:$0xff] }
  0xb7   :  { %1834 = vmatpush1.bf16.msra.mxu1 %v1833_v55  ;;  %1644 = vmatprep.subr.bf16.mxu0 %v1643_v56  ;;  %v919_v55 = vld [vmem:[%s3657_s4 + $0x50] sm:$0xff]  ;;  %v922_v56 = vld [vmem:[%s3657_s4 + $0x68] sm:$0xff] }
  0xb8   :  { %1836 = vmatprep.subr.bf16.mxu1 %v1835_v60  ;;  %v983_v60 = vld [vmem:[%s3657_s4 + $0x250] sm:$0xff]  ;;  %v1857_v0 = vpack.c.bf16 %v919_v55, %v917_v54  ;;  %v1877_v54 = vpack.c.bf16 %v939_v51, %v937_v50  ;;  %v424_v50 = vld [vmem:[%s3658_s3] sm:$0xf]  ;;  %v436_v51 = vsub.s32 2, %v2313_v61 }
  0xba   :  { %1646 = vmatpush1.bf16.msra.mxu0 %v1645_v3  ;;  %v923_v3 = vld [vmem:[%s3657_s4 + $0x70] sm:$0xff] }
  0xbb   :  { %1838 = vmatpush1.bf16.msra.mxu1 %v1837_v4  ;;  %1648 = vmatprep.subr.bf16.mxu0 %v1647_v5  ;;  %v926_v4 = vld [vmem:[%s3657_s4 + $0x88] sm:$0xff]  ;;  %v1921_v5 = vpack.c.bf16 %v983_v60, %v981_v59  ;;  %v1861_v13 = vpack.c.bf16 %v923_v3, %v921_v2  ;;  %v1885_v2 = vpack.c.bf16 %v947_v63, %v945_v62 }
  0xbc   :  { %1840 = vmatprep.subr.bf16.mxu1 %v1839_v9  ;;  %v987_v9 = vld [vmem:[%s3657_s4 + $0x270] sm:$0xff]  ;;  %v1863_v14 = vpack.c.bf16 %v928_v6, %v926_v4  ;;  %v949_v4 = vld [vmem:[%s3657_s4 + $0x140] sm:$0xff]  ;;  %v954_v6 = vld [vmem:[%s3657_s4 + $0x168] sm:$0xff] }
  0xbe   :  { %1650 = vmatpush1.bf16.msra.mxu0 %v1649_v16  ;;  %v927_v16 = vld [vmem:[%s3657_s4 + $0x90] sm:$0xff] }
  0xbf   :  { %1842 = vmatpush1.bf16.msra.mxu1 %v1841_v17  ;;  %1652 = vmatprep.subr.bf16.mxu0 %v1651_v18  ;;  %v930_v17 = vld [vmem:[%s3657_s4 + $0xa8] sm:$0xff]  ;;  %v1925_v18 = vpack.c.bf16 %v987_v9, %v985_v8  ;;  %v1865_v27 = vpack.c.bf16 %v927_v16, %v925_v15  ;;  %v1893_v15 = vpack.c.bf16 %v955_v12, %v953_v10  ;;  %v1169_v10 = vld [vmem:[%s3660_s6 + $0x10] sm:$0xff]  ;;  %v1170_v12 = vld [vmem:[%s3660_s6 + $0x18] sm:$0xff] }
  0xc0   :  { %1844 = vmatprep.subr.bf16.mxu1 %v1843_v22  ;;  %v991_v22 = vld [vmem:[%s3657_s4 + $0x290] sm:$0xff]  ;;  %v1867_v28 = vpack.c.bf16 %v932_v19, %v930_v17  ;;  %v957_v17 = vld [vmem:[%s3657_s4 + $0x180] sm:$0xff]  ;;  %v962_v19 = vld [vmem:[%s3657_s4 + $0x1a8] sm:$0xff] }
  0xc2   :  { %1654 = vmatpush1.bf16.msra.mxu0 %v1653_v30  ;;  %v931_v30 = vld [vmem:[%s3657_s4 + $0xb0] sm:$0xff] }
  0xc3   :  { %1846 = vmatpush1.bf16.msra.mxu1 %v1845_v31  ;;  %1848 = vmatprep.subr.bf16.mxu0 %v1847_v11  ;;  %v934_v31 = vld [vmem:[%s3657_s4 + $0xc8] sm:$0xff]  ;;  %v1929_v11 = vpack.c.bf16 %v991_v22, %v989_v21  ;;  %v1869_v39 = vpack.c.bf16 %v931_v30, %v929_v29  ;;  %v1901_v29 = vpack.c.bf16 %v963_v26, %v961_v23  ;;  %v1177_v23 = vld [vmem:[%s3660_s6 + $0x50] sm:$0xff]  ;;  %v1178_v26 = vld [vmem:[%s3660_s6 + $0x58] sm:$0xff] }
  0xc4   :  { %1912 = vmatprep.subr.bf16.mxu1 %v1911_v37  ;;  %v998_v37 = vld [vmem:[%s3657_s4 + $0x2c8] sm:$0xff]  ;;  %v1871_v40 = vpack.c.bf16 %v936_v32, %v934_v31  ;;  %v965_v31 = vld [vmem:[%s3657_s4 + $0x1c0] sm:$0xff] }
  0xc5   :  { %686 = vmatmul.mubr.f32.vlgmr.msra.gmra.mrb[0].mxu0 %v2893_v35  ;;  %v1935_v46 = vpack.c.bf16 %v1000_v38, %v998_v37  ;;  %v1001_v37 = vld [vmem:[%s3657_s4 + $0x2e0] sm:$0xff]  ;;  %v1003_v38 = vld [vmem:[%s3657_s4 + $0x2f0] sm:$0xff] }
  0xc6   :  { %899 = vmatmul.mubr.f32.vlgmr.msra.gmra.mrb[0].mxu1 %v2893_v35  ;;  %1850 = vmatpush1.bf16.msra.mxu0 %v1849_v42  ;;  %v924_v35 = vld [vmem:[%s3657_s4 + $0x78] sm:$0xff]  ;;  %v935_v42 = vld [vmem:[%s3657_s4 + $0xd0] sm:$0xff] }
  0xc7   :  { %1852 = vmatprep.subr.bf16.mxu0 %v1851_v43  ;;  %1914 = vmatpush1.bf16.msra.mxu1 %v1913_v25  ;;  %v1859_v1 = vpack.c.bf16 %v924_v35, %v922_v56  ;;  %v938_v43 = vld [vmem:[%s3657_s4 + $0xe8] sm:$0xff]  ;;  %v997_v25 = vld [vmem:[%s3657_s4 + $0x2c0] sm:$0xff] }
  0xc8   :  { %1916 = vmatprep.subr.bf16.mxu1 %v1915_v48  ;;  %v1873_v48 = vpack.c.bf16 %v935_v42, %v933_v41  ;;  %v1875_v49 = vpack.c.bf16 %v940_v45, %v938_v43  ;;  %v1937_v52 = vpack.c.bf16 %v999_v47, %v997_v25  ;;  %v941_v56 = vld [vmem:[%s3657_s4 + $0x100] sm:$0xff]  ;;  %v946_v35 = vld [vmem:[%s3657_s4 + $0x128] sm:$0xff]  ;;  %v972_v41 = vld [vmem:[%s3657_s4 + $0x1f8] sm:$0xff]  ;;  %v1998_v47 = vmov 0.0  }
  0xc9   :  { %v969_v43 = vld [vmem:[%s3657_s4 + $0x1e0] sm:$0xff] }
  0xca   :  { %1854 = vmatpush1.bf16.msra.mxu0 %v1853_v53  ;;  %v942_v53 = vld [vmem:[%s3657_s4 + $0x108] sm:$0xff]  ;;  %v1005_v25 = vld [vmem:[%s3657_s4 + $0x300] sm:$0xff] }
  0xcb   :  { %1856 = vmatprep.subr.bf16.mxu0 %v1855_v24  ;;  %1918 = vmatpush1.bf16.msra.mxu1 %v1917_v57  ;;  %v944_v24 = vld [vmem:[%s3657_s4 + $0x118] sm:$0xff]  ;;  %v943_v57 = vld [vmem:[%s3657_s4 + $0x110] sm:$0xff] }
  0xcc   :  { %1920 = vmatprep.subr.bf16.mxu1 %v1919_v58  ;;  %v1879_v55 = vpack.c.bf16 %v944_v24, %v942_v53  ;;  %v948_v58 = vld [vmem:[%s3657_s4 + $0x138] sm:$0xff]  ;;  %v1881_v59 = vpack.c.bf16 %v943_v57, %v941_v56  ;;  %v440_v53 = vsub.s32 3, %v2313_v61 }
  0xcd   :  { %v1883_v60 = vpack.c.bf16 %v948_v58, %v946_v35 }
  0xce   :  { %1858 = vmatpush1.bf16.msra.mxu0 %v1857_v0  ;;  %v950_v0 = vld [vmem:[%s3657_s4 + $0x148] sm:$0xff]  ;;  %v441_v56 = vrot.slane %v424_v50, %v440_v53 }
  0xcf   :  { %1860 = vmatprep.subr.bf16.mxu0 %v1859_v1  ;;  %1922 = vmatpush1.bf16.msra.mxu1 %v1921_v5  ;;  %v952_v1 = vld [vmem:[%s3657_s4 + $0x158] sm:$0xff]  ;;  %v951_v5 = vld [vmem:[%s3657_s4 + $0x150] sm:$0xff] }
  0xd0   :  { %1924 = vmatprep.subr.bf16.mxu1 %v1923_v7  ;;  %v1887_v3 = vpack.c.bf16 %v952_v1, %v950_v0  ;;  %v956_v7 = vld [vmem:[%s3657_s4 + $0x178] sm:$0xff]  ;;  %v1889_v8 = vpack.c.bf16 %v951_v5, %v949_v4  ;;  %v1186_v5 = vld [vmem:[%s3659_s7] sm:$0xff] }
  0xd1   :  { %v1891_v9 = vpack.c.bf16 %v956_v7, %v954_v6  ;;  %v1167_v6 = vld [vmem:[%s3660_s6] sm:$0xff]  ;;  %v1168_v7 = vld [vmem:[%s3660_s6 + $0x8] sm:$0xff] }
  0xd2   :  { %1862 = vmatpush1.bf16.msra.mxu0 %v1861_v13  ;;  %v958_v13 = vld [vmem:[%s3657_s4 + $0x188] sm:$0xff] }
  0xd3   :  { %1864 = vmatprep.subr.bf16.mxu0 %v1863_v14  ;;  %1926 = vmatpush1.bf16.msra.mxu1 %v1925_v18  ;;  %v960_v14 = vld [vmem:[%s3657_s4 + $0x198] sm:$0xff]  ;;  %v959_v18 = vld [vmem:[%s3657_s4 + $0x190] sm:$0xff] }
  0xd4   :  { %1928 = vmatprep.subr.bf16.mxu1 %v1927_v20  ;;  %v1895_v16 = vpack.c.bf16 %v960_v14, %v958_v13  ;;  %v964_v20 = vld [vmem:[%s3657_s4 + $0x1b8] sm:$0xff]  ;;  %v1897_v21 = vpack.c.bf16 %v959_v18, %v957_v17  ;;  %v1947_v13 = vpack.c.bf16 %v1170_v12, %v1169_v10  ;;  %v1171_v14 = vld [vmem:[%s3660_s6 + $0x20] sm:$0xff]  ;;  %v1173_v17 = vld [vmem:[%s3660_s6 + $0x30] sm:$0xff] }
  0xd5   :  { %v1899_v22 = vpack.c.bf16 %v964_v20, %v962_v19  ;;  %v1174_v18 = vld [vmem:[%s3660_s6 + $0x38] sm:$0xff]  ;;  %v1175_v20 = vld [vmem:[%s3660_s6 + $0x40] sm:$0xff] }
  0xd6   :  { %1866 = vmatpush1.bf16.msra.mxu0 %v1865_v27  ;;  %v966_v27 = vld [vmem:[%s3657_s4 + $0x1c8] sm:$0xff]  ;;  %v1953_v19 = vpack.c.bf16 %v1174_v18, %v1173_v17 }
  0xd7   :  { %1868 = vmatprep.subr.bf16.mxu0 %v1867_v28  ;;  %1930 = vmatpush1.bf16.msra.mxu1 %v1929_v11  ;;  %v968_v28 = vld [vmem:[%s3657_s4 + $0x1d8] sm:$0xff]  ;;  %v967_v11 = vld [vmem:[%s3657_s4 + $0x1d0] sm:$0xff] }
  0xd8   :  { %1932 = vmatprep.subr.bf16.mxu1 %v1931_v33  ;;  %v1903_v30 = vpack.c.bf16 %v968_v28, %v966_v27  ;;  %v1905_v32 = vpack.c.bf16 %v967_v11, %v965_v31  ;;  %v1002_v33 = vld [vmem:[%s3657_s4 + $0x2e8] sm:$0xff]  ;;  %v1959_v27 = vpack.c.bf16 %v1178_v26, %v1177_v23  ;;  %v1179_v28 = vld [vmem:[%s3660_s6 + $0x60] sm:$0xff]  ;;  %v1181_v31 = vld [vmem:[%s3660_s6 + $0x70] sm:$0xff] }
  0xd9   :  { %v1939_v36 = vpack.c.bf16 %v1004_v34, %v1002_v33  ;;  %v1182_v11 = vld [vmem:[%s3660_s6 + $0x78] sm:$0xff]  ;;  %v1183_v33 = vld [vmem:[%s3660_s6 + $0x80] sm:$0xff]  ;;  %v1184_v34 = vld [vmem:[%s3660_s6 + $0x88] sm:$0xff] }
  0xda   :  { %1870 = vmatpush1.bf16.msra.mxu0 %v1869_v39  ;;  %v1941_v39 = vpack.c.bf16 %v1003_v38, %v1001_v37  ;;  %v1007_v37 = vld [vmem:[%s3662_s5] sm:$0x3] }
  0xdb   :  { %1872 = vmatprep.subr.bf16.mxu0 %v1871_v40  ;;  %1934 = vmatpush1.bf16.msra.mxu1 %v1933_v44  ;;  %v970_v40 = vld [vmem:[%s3657_s4 + $0x1e8] sm:$0xff]  ;;  %v971_v44 = vld [vmem:[%s3657_s4 + $0x1f0] sm:$0xff] }
  0xdc   :  { %1936 = vmatprep.subr.bf16.mxu1 %v1935_v46  ;;  %v1907_v42 = vpack.c.bf16 %v972_v41, %v970_v40  ;;  %v1909_v45 = vpack.c.bf16 %v971_v44, %v969_v43  ;;  %v1006_v46 = vld [vmem:[%s3657_s4 + $0x308] sm:$0xff] }
  0xde   :  { %1874 = vmatpush1.bf16.msra.mxu0 %v1873_v48  ;;  %v1999_v48 = vmov 0.0|0.0  }
  0xdf   :  { %1876 = vmatprep.subr.bf16.mxu0 %v1875_v49  ;;  %1938 = vmatpush1.bf16.msra.mxu1 %v1937_v52  ;;  %v428_v49 = vsub.s32 0, %v2313_v61  ;;  %v432_v52 = vsub.s32 1, %v2313_v61  ;;  %v1343_v61 = vld [vmem:[%s3663_s9] sm:$0xff] }
  0xe0   :  { %1940 = vmatprep.subr.bf16.mxu1 %v1939_v36  ;;  %v1968_v36 = vpack.c.bf16 %v1184_v34, %v1183_v33 }
  0xe1   :  { %v429_v24 = vrot.slane %v424_v50, %v428_v49  ;;  %v1012_v38 = vrot.slane %v1007_v37, %v428_v49  ;;  %v1344_v49 = vld [vmem:[%s3663_s9 + $0x8] sm:$0xff] }
  0xe2   :  { %1878 = vmatpush1.bf16.msra.mxu0 %v1877_v54  ;;  %v437_v54 = vrot.slane %v424_v50, %v436_v51 }
  0xe3   :  { %1880 = vmatprep.subr.bf16.mxu0 %v1879_v55  ;;  %1942 = vmatpush1.bf16.msra.mxu1 %v1941_v39  ;;  %v433_v55 = vrot.slane %v424_v50, %v432_v52  ;;  %v1016_v39 = vrot.slane %v1007_v37, %v432_v52  ;;  %v1971_v52 = vpack.c.bf16 %v1344_v49, %v1343_v61 }
  0xe4   :  { %1126 = vmatprep.subr.mxu1 %v1006_v46 }
  0xe6   :  { %1882 = vmatpush1.bf16.msra.mxu0 %v1881_v59 }
  0xe7   :  { %1884 = vmatprep.subr.bf16.mxu0 %v1883_v60  ;;  %1127 = vmatpush1.msra.mxu1 %v1005_v25 }
  0xe8   :  { %1447 = vmatprep.subr.mxu1 %v1998_v47 }
  0xea   :  { %1886 = vmatpush1.bf16.msra.mxu0 %v1885_v2 }
  0xeb   :  { %1888 = vmatprep.subr.bf16.mxu0 %v1887_v3 }
  0xee   :  { %1890 = vmatpush1.bf16.msra.mxu0 %v1889_v8  ;;  %v1185_v8 = vld [vmem:[%s3661_s1] sm:$0x3] }
  0xef   :  { %1892 = vmatprep.subr.bf16.mxu0 %v1891_v9  ;;  %v1944_v9 = vpack.c.bf16 %v1168_v7, %v1167_v6 }
  0xf2   :  { %1894 = vmatpush1.bf16.msra.mxu0 %v1893_v15  ;;  %v1172_v15 = vld [vmem:[%s3660_s6 + $0x28] sm:$0xff] }
  0xf3   :  { %1896 = vmatprep.subr.bf16.mxu0 %v1895_v16  ;;  %v1950_v16 = vpack.c.bf16 %v1172_v15, %v1171_v14 }
  0xf6   :  { %1898 = vmatpush1.bf16.msra.mxu0 %v1897_v21  ;;  %v1176_v21 = vld [vmem:[%s3660_s6 + $0x48] sm:$0xff] }
  0xf7   :  { %1900 = vmatprep.subr.bf16.mxu0 %v1899_v22  ;;  %v1956_v22 = vpack.c.bf16 %v1176_v21, %v1175_v20 }
  0xfa   :  { %1902 = vmatpush1.bf16.msra.mxu0 %v1901_v29  ;;  %v1180_v29 = vld [vmem:[%s3660_s6 + $0x68] sm:$0xff] }
  0xfb   :  { %1904 = vmatprep.subr.bf16.mxu0 %v1903_v30  ;;  %v1962_v30 = vpack.c.bf16 %v1180_v29, %v1179_v28 }
  0xfe   :  { %1906 = vmatpush1.bf16.msra.mxu0 %v1905_v32  ;;  %v1965_v32 = vpack.c.bf16 %v1182_v11, %v1181_v31 }
  0xff   :  { %1908 = vmatprep.subr.bf16.mxu0 %v1907_v42 }
 0x102   :  { %1910 = vmatpush1.bf16.msra.mxu0 %v1909_v45 }
 0x103   :  { %1970 = vmatprep.subr.bf16.mxu0 %v1999_v48 }
 0x198   :  { %v687_v57 = vpop.f32.mrb[0].mxu0 }
 0x199   :  { %v1976_v35 = vadd.f32 %v687_v57, %v429_v24  ;;  %v900_v58 = vpop.f32.mrb[0].mxu1  ;;  %v689_v59 = vpop.f32.mrb[1].mxu0  ;;  %v1345_v24 = vld [vmem:[%s3663_s9 + $0x10] sm:$0xff]  ;;  %v1437_v57 = vld [vmem:[%s3664_s8] ss:$0 sm:$0xff] }
 0x19a   :  { %v1978_v60 = vadd.f32 %v900_v58, %v437_v54  ;;  %v1977_v62 = vadd.f32 %v689_v59, %v433_v55  ;;  %v902_v63 = vpop.f32.mrb[1].mxu1  ;;  %v1346_v54 = vld [vmem:[%s3663_s9 + $0x18] sm:$0xff] }
 0x19b   :  { %v1979_v0 = vadd.f32 %v902_v63, %v441_v56  ;;  %v905_v2 = vmax.f32 %v1976_v35, 0.0  ;;  %v1974_v55 = vpack.c.bf16 %v1346_v54, %v1345_v24 }
 0x19c   :  { %v906_v1 = vmax.f32 %v1977_v62, 0.0  ;;  %v907_v4 = vmax.f32 %v1978_v60, 0.0  ;;  %v1438_v60 = vld [vmem:[%s3665_s10] ss:$0 sm:$0xff] }
 0x19d   :  { %v908_v3 = vmax.f32 %v1979_v0, 0.0 }
 0x19e   :  { %1087 = vmatprep.mubr.f32.mxu0 %v906_v1 }
 0x19f   :  { %1434 = vmatprep.mubr.msk.f32.mxu1 %vm1019_vm0, %v908_v3  ;;  %1088 = vmatmul.mubr.f32.vlgmr.msra.gmra.mrb[2].mxu0 %v905_v2 }
 0x1a0   :  { %1159 = vmatmul.mubr.f32.vlgmr.msra.gmra.mrb[2].mxu1 %v907_v4  ;;  %1460 = vmatprep.mubr.msk.f32.mxu0 %vm2000_vm1, %v1998_v47 }
 0x1a1   :  { %1448 = vmatpush3.msra.mxu1 %v1186_v5  ;;  %1449 = vmatprep.mubr.msk.f32.mxu1 %vm2000_vm1, %v1998_v47 }
 0x1a2   :  { %1943 = vmatprep.subr.bf16.mxu1 %v1999_v48  ;;  %1972 = vmatpush3.bf16.msra.mxu0 %v1971_v52 }
 0x1a3   :  { %1973 = vmatprep.subr.bf16.mxu0 %v1999_v48 }
 0x1a4   :  { %1450 = vmatmul.mubr.msk.f32.vlgmr.msra.gmra.mrb[4].mxu1 %vm1019_vm0, %v1185_v8 }
 0x1a5   :  { %1945 = vmatpush1.bf16.msra.mxu1 %v1944_v9 }
 0x1a6   :  { %1946 = vmatprep.subr.bf16.mxu1 %v1999_v48  ;;  %1975 = vmatpush3.bf16.msra.mxu0 %v1974_v55 }
 0x1a9   :  { %1948 = vmatpush1.bf16.msra.mxu1 %v1947_v13 }
 0x1aa   :  { %1949 = vmatprep.subr.bf16.mxu1 %v1999_v48 }
 0x1ad   :  { %1951 = vmatpush1.bf16.msra.mxu1 %v1950_v16 }
 0x1ae   :  { %1952 = vmatprep.subr.bf16.mxu1 %v1999_v48 }
 0x1b1   :  { %1954 = vmatpush1.bf16.msra.mxu1 %v1953_v19 }
 0x1b2   :  { %1955 = vmatprep.subr.bf16.mxu1 %v1999_v48 }
 0x1b5   :  { %1957 = vmatpush1.bf16.msra.mxu1 %v1956_v22 }
 0x1b6   :  { %1958 = vmatprep.subr.bf16.mxu1 %v1999_v48 }
 0x1b9   :  { %1960 = vmatpush1.bf16.msra.mxu1 %v1959_v27 }
 0x1ba   :  { %1961 = vmatprep.subr.bf16.mxu1 %v1999_v48 }
 0x1bd   :  { %1963 = vmatpush1.bf16.msra.mxu1 %v1962_v30 }
 0x1be   :  { %1964 = vmatprep.subr.bf16.mxu1 %v1999_v48 }
 0x1c1   :  { %1966 = vmatpush1.bf16.msra.mxu1 %v1965_v32 }
 0x1c2   :  { %1967 = vmatprep.subr.bf16.mxu1 %v1999_v48 }
 0x1c5   :  { %1969 = vmatpush1.bf16.msra.mxu1 %v1968_v36 }
 0x272   :  { %v1089_v40 = vpop.f32.mrb[2].mxu0 }
 0x273   :  { %v1090_v41 = vadd.f32 %v1089_v40, %v1012_v38  ;;  %v1160_v42 = vpop.f32.mrb[2].mxu1  ;;  %v1091_v43 = vpop.f32.mrb[3].mxu0 }
 0x274   :  { %v1092_v44 = vadd.f32 %v1091_v43, %v1016_v39  ;;  %v1162_v45 = vpop.f32.mrb[3].mxu1 }
 0x275   :  { %v1161_v46 = vadd.f32 %v1160_v42, %v1090_v41 }
 0x276   :  { %v1163_v25 = vadd.f32 %v1162_v45, %v1092_v44 }
 0x277   :  { %v1256_v47 = vpop.f32.mrb[4].mxu1  ;;  %v1165_v53 = vmax.f32 %v1161_v46, 0.0 }
 0x278   :  { %v1166_v50 = vmax.f32 %v1163_v25, 0.0  ;;  %v1451_v51 = vpop.f32.mrb[5].mxu1 }
 0x27a   :  { %1436 = vmatprep.mubr.msk.f32.mxu1 %vm1260_vm2, %v1166_v50 }
 0x27b   :  { %1329 = vmatmul.mubr.f32.vlgmr.msra.gmra.mrb[6].mxu1 %v1165_v53 }
 0x34e   :  { %v1330_v56 = vpop.f32.mrb[6].mxu1 }
 0x34f   :  { %v1331_v35 = vadd.f32 %v1330_v56, %v1256_v47  ;;  %v1332_v58 = vpop.f32.mrb[7].mxu1 }
 0x351   :  { %v1341_v59 = vadd.f32 %v1437_v57, %v1331_v35 }
 0x353   :  { %v1342_v48 = vmax.f32 %v1341_v59, 0.0 }
 0x355   :  { %1461 = vmatmul.mubr.msk.f32.vlgmr.msra.gmra.mrb[4].mxu0 %vm1354_vm3, %v1342_v48 }
 0x428   :  { %v1424_v62 = vpop.f32.mrb[4].mxu0 }
 0x429   :  { %v1425_v63 = vadd.f32 %v1438_v60, %v1424_v62  ;;  %v1462_v0 = vpop.f32.mrb[5].mxu0 }
 0x42b   :  { %1428 = vst [vmem:[%s3666_s11] sm:$0x3] %v1425_v63 }

</bundles_post_ra>
